<compile_context>
chip_gen: v5e
topology: v5e:2x2
jax: 0.10.0
libtpu: 0.0.40
codegen_flags: <defaults>
</compile_context>

<pallas_src>
import functools

import jax
import jax.numpy as jnp
from jax.experimental import pallas as pl
from jax.experimental.pallas import tpu as pltpu


def _round_up(x, m):
    return ((x + m - 1) // m) * m


# ----------------------- host-side constants: folded Welch DFT matrix -----------------------
def make_welch_dft(fs, nperseg, nseg, lpad):
    """Real-DFT matrix D: [nperseg, 2*lpad] (cos | sin columns).

    For a *detrended* segment s [*, nperseg],
        sum_over_segments( (s @ D[:, :lpad])**2 + (s @ D[:, lpad:])**2 )
    equals the scipy.signal.welch PSD (periodic Hann window, density scaling,
    one-sided doubling and the 1/nseg segment average are folded into the columns).
    Columns for padded bins (k >= nperseg//2 + 1) are zero, keeping the PSD tail at 0.
    """
    n = jnp.arange(nperseg, dtype=jnp.float32)
    win = 0.5 - 0.5 * jnp.cos(2.0 * jnp.pi * n / nperseg)          # periodic Hann
    nfreq = nperseg // 2 + 1
    k = jnp.arange(lpad, dtype=jnp.float32)
    ang = 2.0 * jnp.pi * n[:, None] * k[None, :] / nperseg          # [nperseg, lpad]

    scale = 1.0 / (fs * jnp.sum(win * win))                         # density scaling
    if nperseg % 2 == 0:
        dbl = (k > 0) & (k < nperseg // 2)                          # not DC / Nyquist
    else:
        dbl = (k > 0) & (k < nfreq)
    mult = jnp.where(dbl, 2.0, 1.0)
    valid = (k < nfreq).astype(jnp.float32)
    col_scale = jnp.sqrt(mult * scale / nseg) * valid               # [lpad]

    cos_m = win[:, None] * jnp.cos(ang) * col_scale[None, :]
    sin_m = -win[:, None] * jnp.sin(ang) * col_scale[None, :]
    return jnp.concatenate([cos_m, sin_m], axis=1).astype(jnp.float32)   # [nperseg, 2*lpad]


# ----------------------------- parameter construction / packing -----------------------------
def init_params(key, input_channels, output_channels):
    """Deterministic synthetic parameters (PyTorch layouts: Conv1d weight [C_out, C_in, k])."""
    ks = jax.random.split(key, 8)
    s = 0.1
    return {
        "w1": s * jax.random.normal(ks[0], (output_channels, input_channels, 3), jnp.float32),
        "b1": s * jax.random.normal(ks[1], (output_channels,), jnp.float32),
        "w2": s * jax.random.normal(ks[2], (output_channels, output_channels, 3), jnp.float32),
        "b2": s * jax.random.normal(ks[3], (output_channels,), jnp.float32),
        "w3": s * jax.random.normal(ks[4], (output_channels, output_channels, 3), jnp.float32),
        "b3": s * jax.random.normal(ks[5], (output_channels,), jnp.float32),
        "wa": s * jax.random.normal(ks[6], (output_channels, output_channels), jnp.float32),  # 1x1 conv
        "ba": s * jax.random.normal(ks[7], (output_channels,), jnp.float32),
    }


def pack_params(params, input_channels):
    """Pack all TCN/NAM weights into one [4*rpad, 256] f32 slab.

    Row-block i (rows i*rpad .. i*rpad+rpad) holds layer i.  Conv layers: columns are
    [tap0 over cin_pad ch | tap1 | tap2 | bias col]; padded channels get zero columns,
    padded output rows are zero.  NAM block: [wa over rpad cols | bias col].
    """
    c_out = params["w1"].shape[0]
    rpad = _round_up(c_out, 8)
    cinp = _round_up(input_channels, 8)
    width = 256
    assert 3 * max(cinp, rpad) + 1 <= width

    packed = jnp.zeros((4 * rpad, width), jnp.float32)

    def put_conv(buf, blk, w, b, cin_pad):
        co, ci, _ = w.shape
        for t in range(3):
            buf = buf.at[blk * rpad:blk * rpad + co,
                         t * cin_pad:t * cin_pad + ci].set(w[:, :, t])
        buf = buf.at[blk * rpad:blk * rpad + co, 3 * cin_pad].set(b)
        return buf

    packed = put_conv(packed, 0, params["w1"], params["b1"], cinp)
    packed = put_conv(packed, 1, params["w2"], params["b2"], rpad)
    packed = put_conv(packed, 2, params["w3"], params["b3"], rpad)
    packed = packed.at[3 * rpad:3 * rpad + c_out, :c_out].set(params["wa"])
    packed = packed.at[3 * rpad:3 * rpad + c_out, rpad].set(params["ba"])
    return packed


# ----------------------------- Pallas kernel: Welch PSD + TCN + NAM -----------------------------
def _eeg_kernel(x_ref, dft_ref, wp_ref, out_ref, *,
                cinp, c_out, rpad, nperseg, step, nseg, nfreq):
    """Everything resident in VMEM (total footprint ~0.6 MiB).

    x_ref  : [cinp, T_pad]       raw EEG (channels zero-padded to cinp, time lane-padded)
    dft_ref: [nperseg, 2*L]      folded real-DFT matrix (cos | sin)
    wp_ref : [4*rpad, 256]       packed TCN/NAM weights
    out_ref: [c_out, L]          gated features (freq bins >= nfreq are zero)
    """
    L = out_ref.shape[-1]

    lane = jax.lax.broadcasted_iota(jnp.int32, (1, L), 1)
    valid = (lane < nfreq).astype(jnp.float32)                   # true frequency bins

    # ---------- Welch PSD: detrend -> folded-DFT matmul -> power accumulate ----------
    dft = dft_ref[...]                                           # [nperseg, 2L]
    psd = None
    for s in range(nseg):                                        # nseg is tiny; static unroll
        seg = x_ref[:, s * step:s * step + nperseg]              # [cinp, nperseg], lane-aligned
        seg = seg - jnp.mean(seg, axis=-1, keepdims=True)        # detrend='constant'
        ri = jnp.dot(seg, dft, preferred_element_type=jnp.float32)   # [cinp, 2L]
        re = ri[:, :L]
        im = ri[:, L:]
        p = re * re + im * im                                    # window/scale/doubling/1-nseg folded
        psd = p if psd is None else psd + p
    # TODO(synk): default MXU precision rounds operands to bf16; pass
    # precision=jax.lax.Precision.HIGHEST on the dots if bit-level scipy/torch parity matters.

    # ---------- packed weights ----------
    wp = wp_ref[...]
    k1, k23 = 3 * cinp, 3 * rpad
    w1 = wp[0 * rpad:1 * rpad, :k1]
    b1 = wp[0 * rpad:1 * rpad, k1:k1 + 1]
    w2 = wp[1 * rpad:2 * rpad, :k23]
    b2 = wp[1 * rpad:2 * rpad, k23:k23 + 1]
    w3 = wp[2 * rpad:3 * rpad, :k23]
    b3 = wp[2 * rpad:3 * rpad, k23:k23 + 1]
    wa = wp[3 * rpad:4 * rpad, :rpad]
    ba = wp[3 * rpad:4 * rpad, rpad:rpad + 1]

    def conv3_relu(x, w, b):
        # Conv1d(k=3, padding=1) + bias + ReLU: one MXU matmul + one VPU broadcast add.
        z = jnp.zeros_like(x[:, :1])
        xm1 = jnp.concatenate([z, x[:, :L - 1]], axis=1)         # x[l-1], exact zero left pad
        xp1 = jnp.concatenate([x[:, 1:], z], axis=1)             # x[l+1], exact zero right pad
        stacked = jnp.concatenate([xm1, x, xp1], axis=0)         # [3*rows, L], 8-row aligned
        y = jnp.dot(w, stacked, preferred_element_type=jnp.float32)
        # TODO(synk): nn.Dropout(0.2) is identity here (eval-mode semantics).
        return jnp.maximum(y + b, 0.0) * valid                   # re-zero padded freq tail

    y = conv3_relu(psd, w1, b1)                                  # [rpad, L]
    y = conv3_relu(y, w2, b2)
    y = conv3_relu(y, w3, b3)

    # ---------- NAM: 1x1 conv + bias -> sigmoid (EUP) -> elementwise gate (VPU) ----------
    logits = jnp.dot(wa, y, preferred_element_type=jnp.float32) + ba
    gated = y * jax.nn.sigmoid(logits)
    out_ref[...] = gated[:c_out].astype(out_ref.dtype)


def _run_kernel(x_pad, dft, packed_w, *, cinp, c_out, rpad, nperseg, step, nseg, nfreq, lpad):
    kern = functools.partial(_eeg_kernel, cinp=cinp, c_out=c_out, rpad=rpad,
                             nperseg=nperseg, step=step, nseg=nseg, nfreq=nfreq)
    vmem = pl.BlockSpec(memory_space=pltpu.MemorySpace.VMEM)
    flops = (2 * nseg * cinp * nperseg * 2 * lpad                       # Welch DFT matmuls
             + 2 * lpad * rpad * (3 * cinp + 3 * rpad + 3 * rpad + rpad))   # TCN + NAM
    bytes_accessed = 4 * (x_pad.size + dft.size + packed_w.size + c_out * lpad)
    # Gridless whole-array layout on purpose: total VMEM footprint ~0.6 MiB, far under
    # every generation's limit (incl. v7x 64 MiB); any tiling would only add per-step overhead.
    return pl.pallas_call(
        kern,
        out_shape=jax.ShapeDtypeStruct((c_out, lpad), jnp.float32),
        in_specs=[vmem, vmem, vmem],
        out_specs=vmem,
        cost_estimate=pl.CostEstimate(flops=int(flops),
                                      transcendentals=int(rpad * lpad),
                                      bytes_accessed=int(bytes_accessed)),
    )(x_pad, dft, packed_w)


# ----------------------------- module-level wrapper -----------------------------
@functools.partial(jax.jit, static_argnames=("output_channels", "fs", "nperseg"))
def eeg_feature_extractor(eeg_data, dft, packed_w, *, output_channels, fs=250, nperseg=256):
    """eeg_data: [channels, time_steps] -> features: [1, output_channels, nperseg//2 + 1]."""
    c_in, t = eeg_data.shape
    # TODO(synk): scipy.welch shrinks nperseg when time_steps < nperseg; not handled here.
    step = nperseg // 2
    nseg = (t - step) // step
    nfreq = nperseg // 2 + 1
    lpad = _round_up(nfreq, 128)                 # lane-dense frequency length (129 -> 256)
    cinp = _round_up(c_in, 8)                    # 8-row alignment for the layer-1 stack
    rpad = _round_up(output_channels, 8)
    tpad = _round_up(t, 128)

    # Single pad op: channel pad (sublane alignment) + time pad (lane-dense input).
    x_pad = jnp.pad(eeg_data.astype(jnp.float32), ((0, cinp - c_in), (0, tpad - t)))

    feat = _run_kernel(x_pad, dft, packed_w, cinp=cinp, c_out=output_channels, rpad=rpad,
                       nperseg=nperseg, step=step, nseg=nseg, nfreq=nfreq, lpad=lpad)

    # TODO(synk): keep the lane-dense [C_out, 256] output end-to-end if the downstream
    # consumer tolerates padding; sliced here to match the PyTorch [1, C_out, 129] contract.
    return feat[:, :nfreq][None]


if __name__ == "__main__":
    key = jax.random.PRNGKey(0)
    k_data, k_param = jax.random.split(key)

    input_channels = 4     # EEG channels
    output_channels = 8    # TCN feature channels
    time_steps = 600       # -> 3 Welch segments at nperseg=256, 50% overlap
    fs, nperseg = 250, 256

    eeg_data = jax.random.normal(k_data, (input_channels, time_steps), jnp.float32)
    params = init_params(k_param, input_channels, output_channels)
    packed_w = pack_params(params, input_channels)               # packed once, outside jit

    step = nperseg // 2
    nseg = (time_steps - step) // step
    nfreq = nperseg // 2 + 1
    lpad = _round_up(nfreq, 128)
    dft = make_welch_dft(fs, nperseg, nseg, lpad)                # built once, outside jit

    out = eeg_feature_extractor(eeg_data, dft, packed_w,
                                output_channels=output_channels, fs=fs, nperseg=nperseg)
    out = jax.block_until_ready(out)

    assert out.shape == (1, output_channels, nfreq), out.shape
    assert out.dtype == jnp.float32
    assert bool(jnp.all(jnp.isfinite(out)))

    print("KERNEL_OK")
</pallas_src>

<mosaic_0001>
module attributes {stable_mosaic.version = 11 : i64} {
  func.func @_eeg_kernel(%arg0: memref<8x640xf32, #tpu.memory_space<vmem>>, %arg1: memref<256x512xf32, #tpu.memory_space<vmem>>, %arg2: memref<32x256xf32, #tpu.memory_space<vmem>>, %arg3: memref<8x256xf32, #tpu.memory_space<vmem>>) attributes {dimension_semantics = [], scalar_prefetch = 0 : i64, scratch_operands = 0 : i64, tpu.core_type = #tpu.core_type<tc>} {
    %0 = tpu.iota {dimensions = array<i32: 1>} : vector<1x256xi32>
    %c129_i32 = arith.constant 129 : i32
    %1 = vector.broadcast %c129_i32 : i32 to vector<1x256xi32>
    %2 = arith.cmpi slt, %0, %1 : vector<1x256xi32>
    %3 = arith.extui %2 : vector<1x256xi1> to vector<1x256xi32>
    %4 = arith.sitofp %3 : vector<1x256xi32> to vector<1x256xf32>
    %c0 = arith.constant 0 : index
    %c0_0 = arith.constant 0 : index
    %5 = vector.load %arg1[%c0, %c0_0] : memref<256x512xf32, #tpu.memory_space<vmem>>, vector<256x512xf32>
    %c0_1 = arith.constant 0 : index
    %c0_2 = arith.constant 0 : index
    %6 = vector.load %arg0[%c0_1, %c0_2] : memref<8x640xf32, #tpu.memory_space<vmem>>, vector<8x256xf32>
    %cst = arith.constant dense<0.000000e+00> : vector<8xf32>
    %7 = vector.multi_reduction <add>, %6, %cst [1] : vector<8x256xf32> to vector<8xf32>
    %8 = vector.shape_cast %7 : vector<8xf32> to vector<8x1xf32>
    %cst_3 = arith.constant 2.560000e+02 : f32
    %9 = vector.broadcast %cst_3 : f32 to vector<8x1xf32>
    %10 = arith.divf %8, %9 : vector<8x1xf32>
    %11 = vector.broadcast %10 : vector<8x1xf32> to vector<8x256xf32>
    %12 = arith.subf %6, %11 : vector<8x256xf32>
    %cst_4 = arith.constant dense<0.000000e+00> : vector<8x512xf32>
    %13 = tpu.matmul %12, %5, %cst_4 {dimension_numbers = #tpu.dot_dimension_numbers<[1], [0], [0], [1], [0, 0, 1, 1], [], []>} : vector<8x256xf32>, vector<256x512xf32>, vector<8x512xf32> -> vector<8x512xf32>
    %14 = vector.extract_strided_slice %13 {offsets = [0, 0], sizes = [8, 256], strides = [1, 1]} : vector<8x512xf32> to vector<8x256xf32>
    %15 = vector.extract_strided_slice %13 {offsets = [0, 256], sizes = [8, 256], strides = [1, 1]} : vector<8x512xf32> to vector<8x256xf32>
    %16 = arith.mulf %14, %14 : vector<8x256xf32>
    %17 = arith.mulf %15, %15 : vector<8x256xf32>
    %18 = arith.addf %16, %17 : vector<8x256xf32>
    %c0_5 = arith.constant 0 : index
    %c128 = arith.constant 128 : index
    %19 = vector.load %arg0[%c0_5, %c128] : memref<8x640xf32, #tpu.memory_space<vmem>>, vector<8x256xf32>
    %cst_6 = arith.constant dense<0.000000e+00> : vector<8xf32>
    %20 = vector.multi_reduction <add>, %19, %cst_6 [1] : vector<8x256xf32> to vector<8xf32>
    %21 = vector.shape_cast %20 : vector<8xf32> to vector<8x1xf32>
    %cst_7 = arith.constant 2.560000e+02 : f32
    %22 = vector.broadcast %cst_7 : f32 to vector<8x1xf32>
    %23 = arith.divf %21, %22 : vector<8x1xf32>
    %24 = vector.broadcast %23 : vector<8x1xf32> to vector<8x256xf32>
    %25 = arith.subf %19, %24 : vector<8x256xf32>
    %cst_8 = arith.constant dense<0.000000e+00> : vector<8x512xf32>
    %26 = tpu.matmul %25, %5, %cst_8 {dimension_numbers = #tpu.dot_dimension_numbers<[1], [0], [0], [1], [0, 0, 1, 1], [], []>} : vector<8x256xf32>, vector<256x512xf32>, vector<8x512xf32> -> vector<8x512xf32>
    %27 = vector.extract_strided_slice %26 {offsets = [0, 0], sizes = [8, 256], strides = [1, 1]} : vector<8x512xf32> to vector<8x256xf32>
    %28 = vector.extract_strided_slice %26 {offsets = [0, 256], sizes = [8, 256], strides = [1, 1]} : vector<8x512xf32> to vector<8x256xf32>
    %29 = arith.mulf %27, %27 : vector<8x256xf32>
    %30 = arith.mulf %28, %28 : vector<8x256xf32>
    %31 = arith.addf %29, %30 : vector<8x256xf32>
    %32 = arith.addf %18, %31 : vector<8x256xf32>
    %c0_9 = arith.constant 0 : index
    %c256 = arith.constant 256 : index
    %33 = vector.load %arg0[%c0_9, %c256] : memref<8x640xf32, #tpu.memory_space<vmem>>, vector<8x256xf32>
    %cst_10 = arith.constant dense<0.000000e+00> : vector<8xf32>
    %34 = vector.multi_reduction <add>, %33, %cst_10 [1] : vector<8x256xf32> to vector<8xf32>
    %35 = vector.shape_cast %34 : vector<8xf32> to vector<8x1xf32>
    %cst_11 = arith.constant 2.560000e+02 : f32
    %36 = vector.broadcast %cst_11 : f32 to vector<8x1xf32>
    %37 = arith.divf %35, %36 : vector<8x1xf32>
    %38 = vector.broadcast %37 : vector<8x1xf32> to vector<8x256xf32>
    %39 = arith.subf %33, %38 : vector<8x256xf32>
    %cst_12 = arith.constant dense<0.000000e+00> : vector<8x512xf32>
    %40 = tpu.matmul %39, %5, %cst_12 {dimension_numbers = #tpu.dot_dimension_numbers<[1], [0], [0], [1], [0, 0, 1, 1], [], []>} : vector<8x256xf32>, vector<256x512xf32>, vector<8x512xf32> -> vector<8x512xf32>
    %41 = vector.extract_strided_slice %40 {offsets = [0, 0], sizes = [8, 256], strides = [1, 1]} : vector<8x512xf32> to vector<8x256xf32>
    %42 = vector.extract_strided_slice %40 {offsets = [0, 256], sizes = [8, 256], strides = [1, 1]} : vector<8x512xf32> to vector<8x256xf32>
    %43 = arith.mulf %41, %41 : vector<8x256xf32>
    %44 = arith.mulf %42, %42 : vector<8x256xf32>
    %45 = arith.addf %43, %44 : vector<8x256xf32>
    %46 = arith.addf %32, %45 : vector<8x256xf32>
    %c0_13 = arith.constant 0 : index
    %c0_14 = arith.constant 0 : index
    %47 = vector.load %arg2[%c0_13, %c0_14] : memref<32x256xf32, #tpu.memory_space<vmem>>, vector<32x256xf32>
    %48 = vector.extract_strided_slice %47 {offsets = [0, 0], sizes = [8, 24], strides = [1, 1]} : vector<32x256xf32> to vector<8x24xf32>
    %49 = vector.extract_strided_slice %47 {offsets = [0, 24], sizes = [8, 1], strides = [1, 1]} : vector<32x256xf32> to vector<8x1xf32>
    %50 = vector.extract_strided_slice %47 {offsets = [8, 0], sizes = [8, 24], strides = [1, 1]} : vector<32x256xf32> to vector<8x24xf32>
    %51 = vector.extract_strided_slice %47 {offsets = [8, 24], sizes = [8, 1], strides = [1, 1]} : vector<32x256xf32> to vector<8x1xf32>
    %52 = vector.extract_strided_slice %47 {offsets = [16, 0], sizes = [8, 24], strides = [1, 1]} : vector<32x256xf32> to vector<8x24xf32>
    %53 = vector.extract_strided_slice %47 {offsets = [16, 24], sizes = [8, 1], strides = [1, 1]} : vector<32x256xf32> to vector<8x1xf32>
    %54 = vector.extract_strided_slice %47 {offsets = [24, 0], sizes = [8, 8], strides = [1, 1]} : vector<32x256xf32> to vector<8x8xf32>
    %55 = vector.extract_strided_slice %47 {offsets = [24, 8], sizes = [8, 1], strides = [1, 1]} : vector<32x256xf32> to vector<8x1xf32>
    %cst_15 = arith.constant 0.000000e+00 : f32
    %56 = vector.broadcast %cst_15 : f32 to vector<8x1xf32>
    %57 = vector.extract_strided_slice %46 {offsets = [0, 0], sizes = [8, 255], strides = [1, 1]} : vector<8x256xf32> to vector<8x255xf32>
    %58 = tpu.concatenate %56, %57 in 1 : vector<8x1xf32>, vector<8x255xf32> -> vector<8x256xf32>
    %59 = vector.extract_strided_slice %46 {offsets = [0, 1], sizes = [8, 255], strides = [1, 1]} : vector<8x256xf32> to vector<8x255xf32>
    %60 = tpu.concatenate %59, %56 in 1 : vector<8x255xf32>, vector<8x1xf32> -> vector<8x256xf32>
    %61 = tpu.concatenate %58, %46, %60 in 0 : vector<8x256xf32>, vector<8x256xf32>, vector<8x256xf32> -> vector<24x256xf32>
    %cst_16 = arith.constant dense<0.000000e+00> : vector<8x256xf32>
    %62 = tpu.matmul %48, %61, %cst_16 {dimension_numbers = #tpu.dot_dimension_numbers<[1], [0], [0], [1], [0, 0, 1, 1], [], []>} : vector<8x24xf32>, vector<24x256xf32>, vector<8x256xf32> -> vector<8x256xf32>
    %63 = vector.broadcast %49 : vector<8x1xf32> to vector<8x256xf32>
    %64 = arith.addf %62, %63 : vector<8x256xf32>
    %cst_17 = arith.constant 0.000000e+00 : f32
    %65 = vector.broadcast %cst_17 : f32 to vector<8x256xf32>
    %66 = arith.maximumf %64, %65 : vector<8x256xf32>
    %67 = vector.broadcast %4 : vector<1x256xf32> to vector<8x256xf32>
    %68 = arith.mulf %66, %67 : vector<8x256xf32>
    %cst_18 = arith.constant 0.000000e+00 : f32
    %69 = vector.broadcast %cst_18 : f32 to vector<8x1xf32>
    %70 = vector.extract_strided_slice %68 {offsets = [0, 0], sizes = [8, 255], strides = [1, 1]} : vector<8x256xf32> to vector<8x255xf32>
    %71 = tpu.concatenate %69, %70 in 1 : vector<8x1xf32>, vector<8x255xf32> -> vector<8x256xf32>
    %72 = vector.extract_strided_slice %68 {offsets = [0, 1], sizes = [8, 255], strides = [1, 1]} : vector<8x256xf32> to vector<8x255xf32>
    %73 = tpu.concatenate %72, %69 in 1 : vector<8x255xf32>, vector<8x1xf32> -> vector<8x256xf32>
    %74 = tpu.concatenate %71, %68, %73 in 0 : vector<8x256xf32>, vector<8x256xf32>, vector<8x256xf32> -> vector<24x256xf32>
    %cst_19 = arith.constant dense<0.000000e+00> : vector<8x256xf32>
    %75 = tpu.matmul %50, %74, %cst_19 {dimension_numbers = #tpu.dot_dimension_numbers<[1], [0], [0], [1], [0, 0, 1, 1], [], []>} : vector<8x24xf32>, vector<24x256xf32>, vector<8x256xf32> -> vector<8x256xf32>
    %76 = vector.broadcast %51 : vector<8x1xf32> to vector<8x256xf32>
    %77 = arith.addf %75, %76 : vector<8x256xf32>
    %cst_20 = arith.constant 0.000000e+00 : f32
    %78 = vector.broadcast %cst_20 : f32 to vector<8x256xf32>
    %79 = arith.maximumf %77, %78 : vector<8x256xf32>
    %80 = vector.broadcast %4 : vector<1x256xf32> to vector<8x256xf32>
    %81 = arith.mulf %79, %80 : vector<8x256xf32>
    %cst_21 = arith.constant 0.000000e+00 : f32
    %82 = vector.broadcast %cst_21 : f32 to vector<8x1xf32>
    %83 = vector.extract_strided_slice %81 {offsets = [0, 0], sizes = [8, 255], strides = [1, 1]} : vector<8x256xf32> to vector<8x255xf32>
    %84 = tpu.concatenate %82, %83 in 1 : vector<8x1xf32>, vector<8x255xf32> -> vector<8x256xf32>
    %85 = vector.extract_strided_slice %81 {offsets = [0, 1], sizes = [8, 255], strides = [1, 1]} : vector<8x256xf32> to vector<8x255xf32>
    %86 = tpu.concatenate %85, %82 in 1 : vector<8x255xf32>, vector<8x1xf32> -> vector<8x256xf32>
    %87 = tpu.concatenate %84, %81, %86 in 0 : vector<8x256xf32>, vector<8x256xf32>, vector<8x256xf32> -> vector<24x256xf32>
    %cst_22 = arith.constant dense<0.000000e+00> : vector<8x256xf32>
    %88 = tpu.matmul %52, %87, %cst_22 {dimension_numbers = #tpu.dot_dimension_numbers<[1], [0], [0], [1], [0, 0, 1, 1], [], []>} : vector<8x24xf32>, vector<24x256xf32>, vector<8x256xf32> -> vector<8x256xf32>
    %89 = vector.broadcast %53 : vector<8x1xf32> to vector<8x256xf32>
    %90 = arith.addf %88, %89 : vector<8x256xf32>
    %cst_23 = arith.constant 0.000000e+00 : f32
    %91 = vector.broadcast %cst_23 : f32 to vector<8x256xf32>
    %92 = arith.maximumf %90, %91 : vector<8x256xf32>
    %93 = vector.broadcast %4 : vector<1x256xf32> to vector<8x256xf32>
    %94 = arith.mulf %92, %93 : vector<8x256xf32>
    %cst_24 = arith.constant dense<0.000000e+00> : vector<8x256xf32>
    %95 = tpu.matmul %54, %94, %cst_24 {dimension_numbers = #tpu.dot_dimension_numbers<[1], [0], [0], [1], [0, 0, 1, 1], [], []>} : vector<8x8xf32>, vector<8x256xf32>, vector<8x256xf32> -> vector<8x256xf32>
    %96 = vector.broadcast %55 : vector<8x1xf32> to vector<8x256xf32>
    %97 = arith.addf %95, %96 : vector<8x256xf32>
    %98 = arith.negf %97 : vector<8x256xf32>
    %99 = math.exp %98 : vector<8x256xf32>
    %cst_25 = arith.constant 1.000000e+00 : f32
    %100 = vector.broadcast %cst_25 : f32 to vector<8x256xf32>
    %101 = arith.addf %100, %99 : vector<8x256xf32>
    %102 = arith.divf %100, %101 : vector<8x256xf32>
    %103 = arith.mulf %94, %102 : vector<8x256xf32>
    %c0_26 = arith.constant 0 : index
    %c0_27 = arith.constant 0 : index
    %104 = vector.load %arg3[%c0_26, %c0_27] : memref<8x256xf32, #tpu.memory_space<vmem>>, vector<8x256xf32>
    tpu.vector_store %arg3[%c0_26, %c0_27], %103 {strides = array<i32>} : memref<8x256xf32, #tpu.memory_space<vmem>>, vector<8x256xf32>,
    return
  }
}

</mosaic_0001>

<bundles_post_ra>
// kernel: eeg_feature_extractor.1
= control target key start
LH: loop header
LB: loop body
LE: loop exit
PB: predicated region body
PF: predicated region fallthrough
CT: control target
= control target key end

     0   :  { %8 = vsyncpa [#allocation3], 0  ;;  %s1891_s0 = inlined_call_operand.vmem [shape: f32[8,640], index: 0, kind: input, shape index: {}]   ;;  %s1892_s1 = inlined_call_operand.hbm [shape: f32[256,512], index: 1, kind: input, shape index: {}]   ;;  %s1893_s2 = inlined_call_operand.hbm [shape: f32[32,256], index: 2, kind: input, shape index: {}]   ;;  %s1894_s3 = inlined_call_operand.vmem [shape: f32[8,256], index: 3, kind: output, shape index: {}]  }
   0x1   :  { %s16_s14 = sshll.u32 %s1892_s1, 4  ;;  %s17_s14 = int_to_ptr.hbm [resolvable:$true] %s16_s14 }
   0x2   :  { %9 = vsyncpa [#allocation5], 0  ;;  %s1125_s15 = smov [#allocation2]   ;;  %s29_s19 = sshll.u32 %s1893_s2, 4  ;;  %s30_s19 = int_to_ptr.hbm [resolvable:$true] %s29_s19 }
   0x3   :  { %s18_s16 = sshll.u32 %s1125_s15, 4  ;;  %s1126_s20 = smov 512   ;;  %s19_s16 = int_to_ptr.vmem [resolvable:$true] %s18_s16 }
   0x4   :  { %s1127_s21 = smov 32   ;;  %s1128_s22 = smov [#allocation4]  }
   0x5   :  { %24 = dma.hbm_to_vmem [thread:$0]  %s17_s14, 16384, %s19_s16, [#allocation3], %s1126_s20, %s1126_s20, %s1127_s21  }
   0x6   :  { %s31_s23 = sshll.u32 %s1128_s22, 4  ;;  %s1129_s24 = smov 256   ;;  %s32_s23 = int_to_ptr.vmem [resolvable:$true] %s31_s23 }
   0x7   :  { %s1130_s25 = smov 16  }
   0x8   :  { %37 = dma.hbm_to_vmem [thread:$0]  %s30_s19, 1024, %s32_s23, [#allocation5], %s1129_s24, %s1129_s24, %s1130_s25  }
   0x9   :  { %1121 = dma.done.wait [#allocation3], 16384  }
   0xa   :  { %1122 = vsyncadd [#allocation3], 4294950912 }
   0xb   :  { %1123 = dma.done.wait [#allocation5], 1024  }
   0xc   :  { %1124 = vsyncadd [#allocation5], 4294966272  ;;  %v1166_v0 = vld [vmem:[%s1891_s0] sm:$0xff]  ;;  %v1171_v1 = vld [vmem:[%s1891_s0 + $0x8] sm:$0xff]  ;;  %s1133_s7 = smov 1   ;;  %vm735_vm1 = vcmask 1039360  }
   0xd   :  { %v185_v2 = vadd.f32 %v1171_v1, %v1166_v0  ;;  %v1175_v3 = vld [vmem:[#allocation2 + $0x1e0] sm:$0xff]  ;;  %v1179_v5 = vld [vmem:[#allocation2 + $0x1e8] sm:$0xff]  ;;  %v1199_v12 = vld [vmem:[%s1891_s0 + $0x10] sm:$0xff]  ;;  %vm726_vm2 = vcmask 7168   ;;  %vm745_vm4 = vcmask 195584   ;;  %vm935_vm6 = vcmask 64512  }
   0xe   :  { %v1177_v4 = vld [vmem:[#allocation2 + $0x3e0] sm:$0xff]  ;;  %198 = vmatpush.msra.mxu0 %v1175_v3  ;;  %v1183_v6 = vld [vmem:[#allocation2 + $0x3e8] sm:$0xff]  ;;  %238 = vmatpush.msra.mxu2 %v1179_v5  ;;  %2052 = vst [vmem:[#allocation8_spill] sm:$0xff] %v1199_v12  ;;  %v366_v19 = vadd.f32 %v1199_v12, %v1171_v1  ;;  %vm1849_vm3 = vmneg %vm726_vm2 }
   0xf   :  { %218 = vmatpush.msra.mxu1 %v1177_v4  ;;  %v1185_v7 = vld [vmem:[#allocation2 + $0x1c0] sm:$0xff]  ;;  %186 = vadd.xlane.f32.xlu0 %v185_v2  ;;  %v1190_v9 = vld [vmem:[#allocation2 + $0x1c8] sm:$0xff] }
  0x10   :  { %v1187_v8 = vld [vmem:[#allocation2 + $0x3c0] sm:$0xff]  ;;  %v1192_v10 = vld [vmem:[#allocation2 + $0x3c8] sm:$0xff]  ;;  %258 = vmatpush.msra.mxu3 %v1183_v6  ;;  %199 = vmatpush.msra.mxu0 %v1185_v7 }
  0x11   :  { %v1194_v11 = vld [vmem:[#allocation2 + $0x1a0] sm:$0xff]  ;;  %v1205_v14 = vld [vmem:[#allocation2 + $0x1a8] sm:$0xff]  ;;  %219 = vmatpush.msra.mxu1 %v1187_v8  ;;  %239 = vmatpush.msra.mxu2 %v1190_v9 }
  0x12   :  { %v1203_v13 = vld [vmem:[#allocation2 + $0x3a0] sm:$0xff]  ;;  %v1209_v15 = vld [vmem:[#allocation2 + $0x3a8] sm:$0xff]  ;;  %259 = vmatpush.msra.mxu3 %v1192_v10  ;;  %200 = vmatpush.msra.mxu0 %v1194_v11 }
  0x13   :  { %v1211_v16 = vld [vmem:[#allocation2 + $0x180] sm:$0xff]  ;;  %v1217_v18 = vld [vmem:[#allocation2 + $0x188] sm:$0xff]  ;;  %220 = vmatpush.msra.mxu1 %v1203_v13  ;;  %240 = vmatpush.msra.mxu2 %v1205_v14 }
  0x14   :  { %v1215_v17 = vld [vmem:[#allocation2 + $0x380] sm:$0xff]  ;;  %v1223_v20 = vld [vmem:[#allocation2 + $0x388] sm:$0xff]  ;;  %260 = vmatpush.msra.mxu3 %v1209_v15  ;;  %201 = vmatpush.msra.mxu0 %v1211_v16 }
  0x15   :  { %v1225_v21 = vld [vmem:[#allocation2 + $0x160] sm:$0xff]  ;;  %221 = vmatpush.msra.mxu1 %v1215_v17  ;;  %241 = vmatpush.msra.mxu2 %v1217_v18  ;;  %v1233_v23 = vld [vmem:[#allocation2 + $0x168] sm:$0xff] }
  0x16   :  { %v1229_v22 = vld [vmem:[#allocation2 + $0x360] sm:$0xff]  ;;  %v1235_v24 = vld [vmem:[#allocation2 + $0x368] sm:$0xff]  ;;  %261 = vmatpush.msra.mxu3 %v1223_v20  ;;  %202 = vmatpush.msra.mxu0 %v1225_v21 }
  0x17   :  { %v1239_v25 = vld [vmem:[#allocation2 + $0x140] sm:$0xff]  ;;  %367 = vadd.xlane.f32.xlu0 %v366_v19  ;;  %222 = vmatpush.msra.mxu1 %v1229_v22  ;;  %v1244_v27 = vld [vmem:[#allocation2 + $0x148] sm:$0xff] }
  0x18   :  { %v1241_v26 = vld [vmem:[#allocation2 + $0x340] sm:$0xff]  ;;  %v1246_v28 = vld [vmem:[#allocation2 + $0x348] sm:$0xff]  ;;  %242 = vmatpush.msra.mxu2 %v1233_v23  ;;  %262 = vmatpush.msra.mxu3 %v1235_v24 }
  0x19   :  { %v1250_v29 = vld [vmem:[#allocation2 + $0x120] sm:$0xff]  ;;  %203 = vmatpush.msra.mxu0 %v1239_v25  ;;  %223 = vmatpush.msra.mxu1 %v1241_v26  ;;  %v1256_v31 = vld [vmem:[#allocation2 + $0x128] sm:$0xff] }
  0x1a   :  { %v1252_v30 = vld [vmem:[#allocation2 + $0x320] sm:$0xff]  ;;  %v1258_v32 = vld [vmem:[#allocation2 + $0x328] sm:$0xff]  ;;  %243 = vmatpush.msra.mxu2 %v1244_v27  ;;  %263 = vmatpush.msra.mxu3 %v1246_v28 }
  0x1b   :  { %v1262_v33 = vld [vmem:[#allocation2 + $0x100] sm:$0xff]  ;;  %204 = vmatpush.msra.mxu0 %v1250_v29  ;;  %224 = vmatpush.msra.mxu1 %v1252_v30  ;;  %v1268_v35 = vld [vmem:[#allocation2 + $0x108] sm:$0xff] }
  0x1c   :  { %v1264_v34 = vld [vmem:[#allocation2 + $0x300] sm:$0xff]  ;;  %v1270_v36 = vld [vmem:[#allocation2 + $0x308] sm:$0xff]  ;;  %244 = vmatpush.msra.mxu2 %v1256_v31  ;;  %264 = vmatpush.msra.mxu3 %v1258_v32 }
  0x1d   :  { %v1274_v37 = vld [vmem:[#allocation2 + $0xe0] sm:$0xff]  ;;  %205 = vmatpush.msra.mxu0 %v1262_v33  ;;  %225 = vmatpush.msra.mxu1 %v1264_v34  ;;  %v1280_v39 = vld [vmem:[#allocation2 + $0xe8] sm:$0xff] }
  0x1e   :  { %v1276_v38 = vld [vmem:[#allocation2 + $0x2e0] sm:$0xff]  ;;  %v1282_v40 = vld [vmem:[#allocation2 + $0x2e8] sm:$0xff]  ;;  %245 = vmatpush.msra.mxu2 %v1268_v35  ;;  %265 = vmatpush.msra.mxu3 %v1270_v36 }
  0x1f   :  { %v1286_v41 = vld [vmem:[#allocation2 + $0xc0] sm:$0xff]  ;;  %206 = vmatpush.msra.mxu0 %v1274_v37  ;;  %226 = vmatpush.msra.mxu1 %v1276_v38  ;;  %v1292_v43 = vld [vmem:[#allocation2 + $0xc8] sm:$0xff] }
  0x20   :  { %v1288_v42 = vld [vmem:[#allocation2 + $0x2c0] sm:$0xff]  ;;  %v1294_v44 = vld [vmem:[#allocation2 + $0x2c8] sm:$0xff]  ;;  %246 = vmatpush.msra.mxu2 %v1280_v39  ;;  %266 = vmatpush.msra.mxu3 %v1282_v40 }
  0x21   :  { %v1298_v45 = vld [vmem:[#allocation2 + $0xa0] sm:$0xff]  ;;  %207 = vmatpush.msra.mxu0 %v1286_v41  ;;  %227 = vmatpush.msra.mxu1 %v1288_v42  ;;  %v1304_v47 = vld [vmem:[#allocation2 + $0xa8] sm:$0xff] }
  0x22   :  { %v1300_v46 = vld [vmem:[#allocation2 + $0x2a0] sm:$0xff]  ;;  %v1306_v48 = vld [vmem:[#allocation2 + $0x2a8] sm:$0xff]  ;;  %247 = vmatpush.msra.mxu2 %v1292_v43  ;;  %267 = vmatpush.msra.mxu3 %v1294_v44 }
  0x23   :  { %v1310_v49 = vld [vmem:[#allocation2 + $0x80] sm:$0xff]  ;;  %208 = vmatpush.msra.mxu0 %v1298_v45  ;;  %228 = vmatpush.msra.mxu1 %v1300_v46  ;;  %v1316_v51 = vld [vmem:[#allocation2 + $0x88] sm:$0xff] }
  0x24   :  { %v1312_v50 = vld [vmem:[#allocation2 + $0x280] sm:$0xff]  ;;  %2053 = vst [vmem:[#allocation9_spill] sm:$0xff] %v1316_v51  ;;  %v1318_v52 = vld [vmem:[#allocation2 + $0x288] sm:$0xff]  ;;  %248 = vmatpush.msra.mxu2 %v1304_v47  ;;  %268 = vmatpush.msra.mxu3 %v1306_v48 }
  0x25   :  { %2054 = vst [vmem:[#allocation10_spill] sm:$0xff] %v1318_v52  ;;  %v1322_v53 = vld [vmem:[#allocation2 + $0x60] sm:$0xff]  ;;  %209 = vmatpush.msra.mxu0 %v1310_v49  ;;  %229 = vmatpush.msra.mxu1 %v1312_v50  ;;  %v1328_v55 = vld [vmem:[#allocation2 + $0x68] sm:$0xff] }
  0x26   :  { %2055 = vst [vmem:[#allocation11_spill] sm:$0xff] %v1322_v53  ;;  %v1324_v54 = vld [vmem:[#allocation2 + $0x260] sm:$0xff]  ;;  %v1330_v56 = vld [vmem:[#allocation2 + $0x268] sm:$0xff]  ;;  %249 = vmatpush.msra.mxu2 %v1316_v51  ;;  %269 = vmatpush.msra.mxu3 %v1318_v52 }
  0x27   :  { %2056 = vst [vmem:[#allocation12_spill] sm:$0xff] %v1324_v54  ;;  %v1334_v57 = vld [vmem:[#allocation2 + $0x40] sm:$0xff]  ;;  %210 = vmatpush.msra.mxu0 %v1322_v53  ;;  %230 = vmatpush.msra.mxu1 %v1324_v54  ;;  %v1340_v59 = vld [vmem:[#allocation2 + $0x48] sm:$0xff] }
  0x28   :  { %2057 = vst [vmem:[#allocation13_spill] sm:$0xff] %v1328_v55  ;;  %v1336_v58 = vld [vmem:[#allocation2 + $0x240] sm:$0xff]  ;;  %v1342_v60 = vld [vmem:[#allocation2 + $0x248] sm:$0xff]  ;;  %250 = vmatpush.msra.mxu2 %v1328_v55  ;;  %270 = vmatpush.msra.mxu3 %v1330_v56 }
  0x29   :  { %2058 = vst [vmem:[#allocation14_spill] sm:$0xff] %v1330_v56  ;;  %v1346_v61 = vld [vmem:[#allocation2 + $0x20] sm:$0xff]  ;;  %211 = vmatpush.msra.mxu0 %v1334_v57  ;;  %231 = vmatpush.msra.mxu1 %v1336_v58  ;;  %v1352_v63 = vld [vmem:[#allocation2 + $0x28] sm:$0xff] }
  0x2a   :  { %2059 = vst [vmem:[#allocation15_spill] sm:$0xff] %v1334_v57  ;;  %v1348_v62 = vld [vmem:[#allocation2 + $0x220] sm:$0xff]  ;;  %v1354_v2 = vld [vmem:[#allocation2 + $0x228] sm:$0xff]  ;;  %251 = vmatpush.msra.mxu2 %v1340_v59  ;;  %271 = vmatpush.msra.mxu3 %v1342_v60 }
  0x2b   :  { %2060 = vst [vmem:[#allocation16_spill] sm:$0xff] %v1336_v58  ;;  %v1358_v19 = vld [vmem:[#allocation2] sm:$0xff]  ;;  %212 = vmatpush.msra.mxu0 %v1346_v61  ;;  %232 = vmatpush.msra.mxu1 %v1348_v62  ;;  %v1364_v56 = vld [vmem:[#allocation2 + $0x8] sm:$0xff]  ;;  %v1370_v58 = vld [vmem:[#allocation2 + $0x1f0] sm:$0xff] }
  0x2c   :  { %2061 = vst [vmem:[#allocation17_spill] sm:$0xff] %v1340_v59  ;;  %v1360_v55 = vld [vmem:[#allocation2 + $0x200] sm:$0xff]  ;;  %v1366_v57 = vld [vmem:[#allocation2 + $0x208] sm:$0xff]  ;;  %252 = vmatpush.msra.mxu2 %v1352_v63  ;;  %272 = vmatpush.msra.mxu3 %v1354_v2  ;;  %v1372_v59 = vld [vmem:[#allocation2 + $0x3f0] sm:$0xff] }
  0x2d   :  { %2062 = vst [vmem:[#allocation18_spill] sm:$0xff] %v1342_v60  ;;  %213 = vmatpush.msra.mxu0 %v1358_v19  ;;  %233 = vmatpush.msra.mxu1 %v1360_v55  ;;  %v1376_v60 = vld [vmem:[#allocation2 + $0x1f8] sm:$0xff] }
  0x2e   :  { %2063 = vst [vmem:[#allocation19_spill] sm:$0xff] %v1346_v61  ;;  %v1378_v61 = vld [vmem:[#allocation2 + $0x3f8] sm:$0xff]  ;;  %253 = vmatpush.msra.mxu2 %v1364_v56  ;;  %273 = vmatpush.msra.mxu3 %v1366_v57 }
  0x2f   :  { %2064 = vst [vmem:[#allocation20_spill] sm:$0xff] %v1348_v62  ;;  %v1382_v62 = vld [vmem:[#allocation2 + $0x1d0] sm:$0xff]  ;;  %278 = vmatpush.msrb.mxu0 %v1370_v58  ;;  %298 = vmatpush.msrb.mxu1 %v1372_v59 }
  0x30   :  { %2065 = vst [vmem:[#allocation21_spill] sm:$0xff] %v1352_v63  ;;  %v1384_v63 = vld [vmem:[#allocation2 + $0x3d0] sm:$0xff]  ;;  %318 = vmatpush.msrb.mxu2 %v1376_v60  ;;  %338 = vmatpush.msrb.mxu3 %v1378_v61 }
  0x31   :  { %2066 = vst [vmem:[#allocation22_spill] sm:$0xff] %v1354_v2  ;;  %v1388_v2 = vld [vmem:[#allocation2 + $0x1d8] sm:$0xff]  ;;  %279 = vmatpush.msrb.mxu0 %v1382_v62  ;;  %299 = vmatpush.msrb.mxu1 %v1384_v63 }
  0x32   :  { %2067 = vst [vmem:[#allocation23_spill] sm:$0xff] %v1358_v19  ;;  %v1390_v19 = vld [vmem:[#allocation2 + $0x3d8] sm:$0xff]  ;;  %319 = vmatpush.msrb.mxu2 %v1388_v2 }
  0x33   :  { %2068 = vst [vmem:[#allocation24_spill] sm:$0xff] %v1360_v55  ;;  %v1394_v55 = vld [vmem:[#allocation2 + $0x1b0] sm:$0xff]  ;;  %339 = vmatpush.msrb.mxu3 %v1390_v19 }
  0x34   :  { %2069 = vst [vmem:[#allocation25_spill] sm:$0xff] %v1364_v56  ;;  %v1396_v56 = vld [vmem:[#allocation2 + $0x3b0] sm:$0xff]  ;;  %280 = vmatpush.msrb.mxu0 %v1394_v55 }
  0x35   :  { %2070 = vst [vmem:[#allocation26_spill] sm:$0xff] %v1366_v57  ;;  %v1400_v57 = vld [vmem:[#allocation2 + $0x1b8] sm:$0xff]  ;;  %300 = vmatpush.msrb.mxu1 %v1396_v56 }
  0x36   :  { %2071 = vst [vmem:[#allocation27_spill] sm:$0xff] %v1370_v58  ;;  %v1402_v58 = vld [vmem:[#allocation2 + $0x3b8] sm:$0xff]  ;;  %320 = vmatpush.msrb.mxu2 %v1400_v57 }
  0x37   :  { %2072 = vst [vmem:[#allocation28_spill] sm:$0xff] %v1372_v59  ;;  %v1406_v59 = vld [vmem:[#allocation2 + $0x190] sm:$0xff]  ;;  %340 = vmatpush.msrb.mxu3 %v1402_v58 }
  0x38   :  { %2073 = vst [vmem:[#allocation29_spill] sm:$0xff] %v1376_v60  ;;  %v1408_v60 = vld [vmem:[#allocation2 + $0x390] sm:$0xff]  ;;  %281 = vmatpush.msrb.mxu0 %v1406_v59 }
  0x39   :  { %2074 = vst [vmem:[#allocation30_spill] sm:$0xff] %v1378_v61  ;;  %v1412_v61 = vld [vmem:[#allocation2 + $0x198] sm:$0xff]  ;;  %301 = vmatpush.msrb.mxu1 %v1408_v60 }
  0x3a   :  { %2075 = vst [vmem:[#allocation31_spill] sm:$0xff] %v1382_v62  ;;  %v1414_v62 = vld [vmem:[#allocation2 + $0x398] sm:$0xff]  ;;  %321 = vmatpush.msrb.mxu2 %v1412_v61 }
  0x3b   :  { %2076 = vst [vmem:[#allocation32_spill] sm:$0xff] %v1384_v63  ;;  %v1418_v63 = vld [vmem:[#allocation2 + $0x170] sm:$0xff]  ;;  %341 = vmatpush.msrb.mxu3 %v1414_v62 }
  0x3c   :  { %2077 = vst [vmem:[#allocation33_spill] sm:$0xff] %v1388_v2  ;;  %v1420_v2 = vld [vmem:[#allocation2 + $0x370] sm:$0xff]  ;;  %282 = vmatpush.msrb.mxu0 %v1418_v63 }
  0x3d   :  { %2078 = vst [vmem:[#allocation34_spill] sm:$0xff] %v1390_v19  ;;  %v1424_v19 = vld [vmem:[#allocation2 + $0x178] sm:$0xff]  ;;  %302 = vmatpush.msrb.mxu1 %v1420_v2 }
  0x3e   :  { %2079 = vst [vmem:[#allocation35_spill] sm:$0xff] %v1394_v55  ;;  %v1426_v55 = vld [vmem:[#allocation2 + $0x378] sm:$0xff]  ;;  %322 = vmatpush.msrb.mxu2 %v1424_v19 }
  0x3f   :  { %2080 = vst [vmem:[#allocation36_spill] sm:$0xff] %v1396_v56  ;;  %v1430_v56 = vld [vmem:[#allocation2 + $0x150] sm:$0xff]  ;;  %342 = vmatpush.msrb.mxu3 %v1426_v55 }
  0x40   :  { %2081 = vst [vmem:[#allocation37_spill] sm:$0xff] %v1400_v57  ;;  %v1432_v57 = vld [vmem:[#allocation2 + $0x350] sm:$0xff]  ;;  %283 = vmatpush.msrb.mxu0 %v1430_v56 }
  0x41   :  { %2082 = vst [vmem:[#allocation38_spill] sm:$0xff] %v1402_v58  ;;  %v1436_v58 = vld [vmem:[#allocation2 + $0x158] sm:$0xff]  ;;  %303 = vmatpush.msrb.mxu1 %v1432_v57 }
  0x42   :  { %2083 = vst [vmem:[#allocation39_spill] sm:$0xff] %v1406_v59  ;;  %v1438_v59 = vld [vmem:[#allocation2 + $0x358] sm:$0xff]  ;;  %323 = vmatpush.msrb.mxu2 %v1436_v58 }
  0x43   :  { %2084 = vst [vmem:[#allocation40_spill] sm:$0xff] %v1408_v60  ;;  %v1442_v60 = vld [vmem:[#allocation2 + $0x130] sm:$0xff]  ;;  %343 = vmatpush.msrb.mxu3 %v1438_v59 }
  0x44   :  { %2085 = vst [vmem:[#allocation41_spill] sm:$0xff] %v1412_v61  ;;  %v1444_v61 = vld [vmem:[#allocation2 + $0x330] sm:$0xff]  ;;  %284 = vmatpush.msrb.mxu0 %v1442_v60 }
  0x45   :  { %2086 = vst [vmem:[#allocation42_spill] sm:$0xff] %v1414_v62  ;;  %v1448_v62 = vld [vmem:[#allocation2 + $0x138] sm:$0xff]  ;;  %304 = vmatpush.msrb.mxu1 %v1444_v61 }
  0x46   :  { %2087 = vst [vmem:[#allocation43_spill] sm:$0xff] %v1418_v63  ;;  %v1450_v63 = vld [vmem:[#allocation2 + $0x338] sm:$0xff]  ;;  %324 = vmatpush.msrb.mxu2 %v1448_v62 }
  0x47   :  { %2088 = vst [vmem:[#allocation44_spill] sm:$0xff] %v1420_v2  ;;  %v1454_v2 = vld [vmem:[#allocation2 + $0x110] sm:$0xff]  ;;  %344 = vmatpush.msrb.mxu3 %v1450_v63 }
  0x48   :  { %2089 = vst [vmem:[#allocation45_spill] sm:$0xff] %v1424_v19  ;;  %v1456_v19 = vld [vmem:[#allocation2 + $0x310] sm:$0xff]  ;;  %285 = vmatpush.msrb.mxu0 %v1454_v2 }
  0x49   :  { %2090 = vst [vmem:[#allocation46_spill] sm:$0xff] %v1426_v55  ;;  %v1460_v55 = vld [vmem:[#allocation2 + $0x118] sm:$0xff]  ;;  %305 = vmatpush.msrb.mxu1 %v1456_v19 }
  0x4a   :  { %2091 = vst [vmem:[#allocation47_spill] sm:$0xff] %v1430_v56  ;;  %v1462_v56 = vld [vmem:[#allocation2 + $0x318] sm:$0xff]  ;;  %325 = vmatpush.msrb.mxu2 %v1460_v55 }
  0x4b   :  { %2092 = vst [vmem:[#allocation48_spill] sm:$0xff] %v1432_v57  ;;  %v1466_v57 = vld [vmem:[#allocation2 + $0xf0] sm:$0xff]  ;;  %345 = vmatpush.msrb.mxu3 %v1462_v56 }
  0x4c   :  { %2093 = vst [vmem:[#allocation49_spill] sm:$0xff] %v1436_v58  ;;  %v1468_v58 = vld [vmem:[#allocation2 + $0x2f0] sm:$0xff]  ;;  %286 = vmatpush.msrb.mxu0 %v1466_v57 }
  0x4d   :  { %2094 = vst [vmem:[#allocation50_spill] sm:$0xff] %v1438_v59  ;;  %v1472_v59 = vld [vmem:[#allocation2 + $0xf8] sm:$0xff]  ;;  %306 = vmatpush.msrb.mxu1 %v1468_v58 }
  0x4e   :  { %2095 = vst [vmem:[#allocation51_spill] sm:$0xff] %v1442_v60  ;;  %v1474_v60 = vld [vmem:[#allocation2 + $0x2f8] sm:$0xff]  ;;  %326 = vmatpush.msrb.mxu2 %v1472_v59 }
  0x4f   :  { %2096 = vst [vmem:[#allocation52_spill] sm:$0xff] %v1444_v61  ;;  %v1478_v61 = vld [vmem:[#allocation2 + $0xd0] sm:$0xff]  ;;  %346 = vmatpush.msrb.mxu3 %v1474_v60 }
  0x50   :  { %2097 = vst [vmem:[#allocation53_spill] sm:$0xff] %v1448_v62  ;;  %v1480_v62 = vld [vmem:[#allocation2 + $0x2d0] sm:$0xff]  ;;  %287 = vmatpush.msrb.mxu0 %v1478_v61 }
  0x51   :  { %2098 = vst [vmem:[#allocation54_spill] sm:$0xff] %v1450_v63  ;;  %v1484_v63 = vld [vmem:[#allocation2 + $0xd8] sm:$0xff]  ;;  %307 = vmatpush.msrb.mxu1 %v1480_v62 }
  0x52   :  { %2099 = vst [vmem:[#allocation55_spill] sm:$0xff] %v1454_v2  ;;  %v1486_v2 = vld [vmem:[#allocation2 + $0x2d8] sm:$0xff]  ;;  %327 = vmatpush.msrb.mxu2 %v1484_v63 }
  0x53   :  { %2100 = vst [vmem:[#allocation56_spill] sm:$0xff] %v1456_v19  ;;  %v1490_v19 = vld [vmem:[#allocation2 + $0xb0] sm:$0xff]  ;;  %347 = vmatpush.msrb.mxu3 %v1486_v2 }
  0x54   :  { %2101 = vst [vmem:[#allocation57_spill] sm:$0xff] %v1460_v55  ;;  %v1492_v55 = vld [vmem:[#allocation2 + $0x2b0] sm:$0xff]  ;;  %288 = vmatpush.msrb.mxu0 %v1490_v19 }
  0x55   :  { %2102 = vst [vmem:[#allocation58_spill] sm:$0xff] %v1462_v56  ;;  %v1496_v56 = vld [vmem:[#allocation2 + $0xb8] sm:$0xff]  ;;  %308 = vmatpush.msrb.mxu1 %v1492_v55 }
  0x56   :  { %2103 = vst [vmem:[#allocation59_spill] sm:$0xff] %v1466_v57  ;;  %v1498_v57 = vld [vmem:[#allocation2 + $0x2b8] sm:$0xff]  ;;  %328 = vmatpush.msrb.mxu2 %v1496_v56 }
  0x57   :  { %2104 = vst [vmem:[#allocation60_spill] sm:$0xff] %v1468_v58  ;;  %v1502_v58 = vld [vmem:[#allocation2 + $0x90] sm:$0xff]  ;;  %348 = vmatpush.msrb.mxu3 %v1498_v57 }
  0x58   :  { %2105 = vst [vmem:[#allocation61_spill] sm:$0xff] %v1472_v59  ;;  %v1504_v59 = vld [vmem:[#allocation2 + $0x290] sm:$0xff]  ;;  %289 = vmatpush.msrb.mxu0 %v1502_v58 }
  0x59   :  { %2106 = vst [vmem:[#allocation62_spill] sm:$0xff] %v1474_v60  ;;  %v1508_v60 = vld [vmem:[#allocation2 + $0x98] sm:$0xff]  ;;  %309 = vmatpush.msrb.mxu1 %v1504_v59 }
  0x5a   :  { %2107 = vst [vmem:[#allocation63_spill] sm:$0xff] %v1478_v61  ;;  %v1510_v61 = vld [vmem:[#allocation2 + $0x298] sm:$0xff]  ;;  %329 = vmatpush.msrb.mxu2 %v1508_v60 }
  0x5b   :  { %2108 = vst [vmem:[#allocation64_spill] sm:$0xff] %v1480_v62  ;;  %v1514_v62 = vld [vmem:[#allocation2 + $0x70] sm:$0xff]  ;;  %349 = vmatpush.msrb.mxu3 %v1510_v61 }
  0x5c   :  { %2109 = vst [vmem:[#allocation65_spill] sm:$0xff] %v1484_v63  ;;  %v1516_v63 = vld [vmem:[#allocation2 + $0x270] sm:$0xff]  ;;  %290 = vmatpush.msrb.mxu0 %v1514_v62 }
  0x5d   :  { %2110 = vst [vmem:[#allocation66_spill] sm:$0xff] %v1486_v2  ;;  %v1520_v2 = vld [vmem:[#allocation2 + $0x78] sm:$0xff]  ;;  %310 = vmatpush.msrb.mxu1 %v1516_v63 }
  0x5e   :  { %2111 = vst [vmem:[#allocation67_spill] sm:$0xff] %v1490_v19  ;;  %v1522_v19 = vld [vmem:[#allocation2 + $0x278] sm:$0xff]  ;;  %330 = vmatpush.msrb.mxu2 %v1520_v2 }
  0x5f   :  { %2112 = vst [vmem:[#allocation68_spill] sm:$0xff] %v1492_v55  ;;  %350 = vmatpush.msrb.mxu3 %v1522_v19 }
  0x60   :  { %2113 = vst [vmem:[#allocation69_spill] sm:$0xff] %v1496_v56 }
  0x61   :  { %2114 = vst [vmem:[#allocation70_spill] sm:$0xff] %v1498_v57  ;;  %v1537_v57 = vld [vmem:[#allocation2 + $0x250] sm:$0xff] }
  0x62   :  { %2115 = vst [vmem:[#allocation71_spill] sm:$0xff] %v1502_v58  ;;  %v1535_v58 = vld [vmem:[#allocation2 + $0x50] sm:$0xff]  ;;  %311 = vmatpush.msrb.mxu1 %v1537_v57 }
  0x63   :  { %2116 = vst [vmem:[#allocation72_spill] sm:$0xff] %v1504_v59  ;;  %v1533_v59 = vld [vmem:[%s1891_s0 + $0x18] sm:$0xff]  ;;  %291 = vmatpush.msrb.mxu0 %v1535_v58 }
  0x64   :  { %2117 = vst [vmem:[#allocation73_spill] sm:$0xff] %v1508_v60  ;;  %v1539_v60 = vld [vmem:[#allocation2 + $0x58] sm:$0xff] }
  0x65   :  { %2118 = vst [vmem:[#allocation74_spill] sm:$0xff] %v1510_v61  ;;  %331 = vmatpush.msrb.mxu2 %v1539_v60  ;;  %v1553_v61 = vld [vmem:[#allocation2 + $0x38] sm:$0xff] }
  0x66   :  { %2119 = vst [vmem:[#allocation75_spill] sm:$0xff] %v1514_v62  ;;  %v542_v62 = vadd.f32 %v1533_v59, %v1199_v12 }
  0x67   :  { %2120 = vst [vmem:[#allocation76_spill] sm:$0xff] %v1516_v63  ;;  %v1551_v63 = vld [vmem:[#allocation2 + $0x230] sm:$0xff]  ;;  %332 = vmatpush.msrb.mxu2 %v1553_v61 }
  0x68   :  { %2121 = vst [vmem:[#allocation77_spill] sm:$0xff] %v1520_v2  ;;  %v1545_v2 = vld [vmem:[#allocation2 + $0x258] sm:$0xff]  ;;  %543 = vadd.xlane.f32.xlu1 %v542_v62  ;;  %312 = vmatpush.msrb.mxu1 %v1551_v63  ;;  %v1131_v62 = vmov 256.0  }
  0x69   :  { %2122 = vst [vmem:[#allocation78_spill] sm:$0xff] %v1522_v19  ;;  %351 = vmatpush.msrb.mxu3 %v1545_v2  ;;  %v1549_v19 = vld [vmem:[#allocation2 + $0x30] sm:$0xff]  ;;  %1062 = vrcp.f32 %v1131_v62 }
  0x6a   :  { %2123 = vst [vmem:[#allocation79_spill] sm:$0xff] %v1533_v59  ;;  %292 = vmatpush.msrb.mxu0 %v1549_v19  ;;  %v1556_v59 = vld [vmem:[#allocation2 + $0x238] sm:$0xff] }
  0x6b   :  { %2124 = vst [vmem:[#allocation80_spill] sm:$0xff] %v1535_v58  ;;  %352 = vmatpush.msrb.mxu3 %v1556_v59  ;;  %v1568_v58 = vld [vmem:[#allocation2 + $0x218] sm:$0xff] }
  0x6c   :  { %2125 = vst [vmem:[#allocation81_spill] sm:$0xff] %v1537_v57  ;;  %v1560_v57 = vld [vmem:[#allocation2 + $0x10] sm:$0xff] }
  0x6d   :  { %2126 = vst [vmem:[#allocation82_spill] sm:$0xff] %v1539_v60  ;;  %v1562_v60 = vld [vmem:[#allocation2 + $0x210] sm:$0xff]  ;;  %293 = vmatpush.msrb.mxu0 %v1560_v57  ;;  %353 = vmatpush.msrb.mxu3 %v1568_v58 }
  0x6e   :  { %2127 = vst [vmem:[#allocation83_spill] sm:$0xff] %v1545_v2  ;;  %v1564_v2 = vld [vmem:[#allocation2 + $0x18] sm:$0xff]  ;;  %313 = vmatpush.msrb.mxu1 %v1562_v60 }
  0x6f   :  { %2128 = vst [vmem:[#allocation84_spill] sm:$0xff] %v1549_v19  ;;  %333 = vmatpush.msrb.mxu2 %v1564_v2 }
  0x70   :  { %2129 = vst [vmem:[#allocation85_spill] sm:$0xff] %v1551_v63 }
  0x71   :  { %2130 = vst [vmem:[#allocation86_spill] sm:$0xff] %v1553_v61  ;;  %v1063_v61 = vpop.eup %1062 }
  0x72   :  { %2131 = vst [vmem:[#allocation87_spill] sm:$0xff] %v1556_v59  ;;  %v189_v63 = vmul.f32 256.0, %v1063_v61  ;;  %vm193_vm0 = vweird.f32 %v1063_v61 }
  0x73   :  { %2132 = vst [vmem:[#allocation88_spill] sm:$0xff] %v1560_v57 }
  0x74   :  { %v190_v19 = vsub.f32 1.0, %v189_v63  ;;  %v2140_v63 = vld [vmem:[#allocation19_spill] sm:$0xff] }
  0x76   :  { %v191_v56 = vmul.f32 %v1063_v61, %v190_v19  ;;  %v2141_v19 = vld [vmem:[#allocation20_spill] sm:$0xff] }
  0x78   :  { %v192_v55 = vadd.f32 %v1063_v61, %v191_v56  ;;  %v2136_v56 = vld [vmem:[#allocation15_spill] sm:$0xff] }
  0x7a   :  { %v1573_v12 = vsel %vm193_vm0, %v1063_v61, %v192_v55  ;;  %v2135_v55 = vld [vmem:[#allocation14_spill] sm:$0xff] }
  0x7b   :  { %v2139_v61 = vld [vmem:[#allocation18_spill] sm:$0xff] }
  0x82   :  { %v187_v59 = vpop.xlane.xlu0 %186 }
  0x83   :  { %v195_v57 = vmul.f32 %v1573_v12, %v187_v59  ;;  %v2138_v59 = vld [vmem:[#allocation17_spill] sm:$0xff] }
  0x85   :  { %v196_v54 = vsub.f32 %v1166_v0, %v195_v57  ;;  %v197_v62 = vsub.f32 %v1171_v1, %v195_v57  ;;  %v2133_v0 = vld [vmem:[#allocation12_spill] sm:$0xff] }
  0x86   :  { %v2137_v57 = vld [vmem:[#allocation16_spill] sm:$0xff] }
  0x87   :  { %214 = vmatmul.f32.vlgmr.msra.gmra.mxu0 %v196_v54  ;;  %234 = vmatmul.f32.vlgmr.msra.gmra.mxu1 %v197_v62 }
  0x88   :  { %254 = vmatmul.f32.vlgmr.msra.gmra.mxu2 %v196_v54  ;;  %274 = vmatmul.f32.vlgmr.msra.gmra.mxu3 %v197_v62 }
  0x89   :  { %372 = vmatpush.msra.mxu0 %v1175_v3  ;;  %392 = vmatpush.msra.mxu1 %v1177_v4 }
  0x8a   :  { %412 = vmatpush.msra.mxu2 %v1179_v5  ;;  %432 = vmatpush.msra.mxu3 %v1183_v6 }
  0x8b   :  { %373 = vmatpush.msra.mxu0 %v1185_v7  ;;  %393 = vmatpush.msra.mxu1 %v1187_v8 }
  0x8c   :  { %413 = vmatpush.msra.mxu2 %v1190_v9  ;;  %433 = vmatpush.msra.mxu3 %v1192_v10 }
  0x8d   :  { %374 = vmatpush.msra.mxu0 %v1194_v11  ;;  %394 = vmatpush.msra.mxu1 %v1203_v13 }
  0x8e   :  { %414 = vmatpush.msra.mxu2 %v1205_v14  ;;  %434 = vmatpush.msra.mxu3 %v1209_v15 }
  0x8f   :  { %375 = vmatpush.msra.mxu0 %v1211_v16  ;;  %395 = vmatpush.msra.mxu1 %v1215_v17 }
  0x90   :  { %415 = vmatpush.msra.mxu2 %v1217_v18  ;;  %435 = vmatpush.msra.mxu3 %v1223_v20 }
  0x91   :  { %294 = vmatmul.f32.vlgmr.msrb.gmra.mxu0 %v196_v54  ;;  %314 = vmatmul.f32.vlgmr.msrb.gmra.mxu1 %v197_v62 }
  0x92   :  { %334 = vmatmul.f32.vlgmr.msrb.gmra.mxu2 %v196_v54  ;;  %354 = vmatmul.f32.vlgmr.msrb.gmra.mxu3 %v197_v62  ;;  %v2134_v54 = vld [vmem:[#allocation13_spill] sm:$0xff] }
  0x93   :  { %376 = vmatpush.msra.mxu0 %v1225_v21  ;;  %396 = vmatpush.msra.mxu1 %v1229_v22  ;;  %v2142_v62 = vld [vmem:[#allocation21_spill] sm:$0xff] }
  0x94   :  { %416 = vmatpush.msra.mxu2 %v1233_v23  ;;  %436 = vmatpush.msra.mxu3 %v1235_v24 }
  0x95   :  { %377 = vmatpush.msra.mxu0 %v1239_v25  ;;  %397 = vmatpush.msra.mxu1 %v1241_v26 }
  0x96   :  { %417 = vmatpush.msra.mxu2 %v1244_v27  ;;  %437 = vmatpush.msra.mxu3 %v1246_v28 }
  0x97   :  { %378 = vmatpush.msra.mxu0 %v1250_v29  ;;  %398 = vmatpush.msra.mxu1 %v1252_v30 }
  0x98   :  { %418 = vmatpush.msra.mxu2 %v1256_v31  ;;  %438 = vmatpush.msra.mxu3 %v1258_v32 }
  0x99   :  { %379 = vmatpush.msra.mxu0 %v1262_v33  ;;  %399 = vmatpush.msra.mxu1 %v1264_v34 }
  0x9a   :  { %419 = vmatpush.msra.mxu2 %v1268_v35  ;;  %439 = vmatpush.msra.mxu3 %v1270_v36 }
  0x9b   :  { %380 = vmatpush.msra.mxu0 %v1274_v37  ;;  %400 = vmatpush.msra.mxu1 %v1276_v38 }
  0x9c   :  { %420 = vmatpush.msra.mxu2 %v1280_v39  ;;  %440 = vmatpush.msra.mxu3 %v1282_v40 }
  0x9d   :  { %381 = vmatpush.msra.mxu0 %v1286_v41  ;;  %401 = vmatpush.msra.mxu1 %v1288_v42 }
  0x9e   :  { %421 = vmatpush.msra.mxu2 %v1292_v43  ;;  %441 = vmatpush.msra.mxu3 %v1294_v44 }
  0x9f   :  { %382 = vmatpush.msra.mxu0 %v1298_v45  ;;  %402 = vmatpush.msra.mxu1 %v1300_v46 }
  0xa0   :  { %422 = vmatpush.msra.mxu2 %v1304_v47  ;;  %442 = vmatpush.msra.mxu3 %v1306_v48 }
  0xa1   :  { %383 = vmatpush.msra.mxu0 %v1310_v49  ;;  %403 = vmatpush.msra.mxu1 %v1312_v50 }
  0xa2   :  { %423 = vmatpush.msra.mxu2 %v1316_v51  ;;  %443 = vmatpush.msra.mxu3 %v1318_v52  ;;  %v2185_v52 = vld [vmem:[#allocation64_spill] sm:$0xff]  ;;  %v2189_v51 = vld [vmem:[#allocation67_spill] sm:$0xff] }
  0xa3   :  { %384 = vmatpush.msra.mxu0 %v1322_v53  ;;  %404 = vmatpush.msra.mxu1 %v2133_v0  ;;  %v2143_v53 = vld [vmem:[#allocation22_spill] sm:$0xff]  ;;  %v2144_v0 = vld [vmem:[#allocation23_spill] sm:$0xff] }
  0xa4   :  { %424 = vmatpush.msra.mxu2 %v2134_v54  ;;  %444 = vmatpush.msra.mxu3 %v2135_v55  ;;  %v2145_v54 = vld [vmem:[#allocation24_spill] sm:$0xff]  ;;  %v2146_v55 = vld [vmem:[#allocation25_spill] sm:$0xff] }
  0xa5   :  { %385 = vmatpush.msra.mxu0 %v2136_v56  ;;  %405 = vmatpush.msra.mxu1 %v2137_v57  ;;  %v2147_v56 = vld [vmem:[#allocation26_spill] sm:$0xff]  ;;  %v2148_v57 = vld [vmem:[#allocation27_spill] sm:$0xff] }
  0xa6   :  { %425 = vmatpush.msra.mxu2 %v2138_v59  ;;  %445 = vmatpush.msra.mxu3 %v2139_v61  ;;  %v2149_v59 = vld [vmem:[#allocation28_spill] sm:$0xff]  ;;  %v2150_v61 = vld [vmem:[#allocation29_spill] sm:$0xff] }
  0xa7   :  { %386 = vmatpush.msra.mxu0 %v2140_v63  ;;  %406 = vmatpush.msra.mxu1 %v2141_v19  ;;  %v2151_v63 = vld [vmem:[#allocation30_spill] sm:$0xff]  ;;  %v2152_v19 = vld [vmem:[#allocation31_spill] sm:$0xff] }
  0xa8   :  { %426 = vmatpush.msra.mxu2 %v2142_v62  ;;  %446 = vmatpush.msra.mxu3 %v2143_v53  ;;  %v2153_v62 = vld [vmem:[#allocation32_spill] sm:$0xff]  ;;  %v2154_v53 = vld [vmem:[#allocation33_spill] sm:$0xff] }
  0xa9   :  { %387 = vmatpush.msra.mxu0 %v2144_v0  ;;  %407 = vmatpush.msra.mxu1 %v2145_v54  ;;  %v2155_v0 = vld [vmem:[#allocation34_spill] sm:$0xff]  ;;  %v2156_v54 = vld [vmem:[#allocation35_spill] sm:$0xff] }
  0xaa   :  { %427 = vmatpush.msra.mxu2 %v2146_v55  ;;  %447 = vmatpush.msra.mxu3 %v2147_v56  ;;  %v2157_v55 = vld [vmem:[#allocation36_spill] sm:$0xff]  ;;  %v2158_v56 = vld [vmem:[#allocation37_spill] sm:$0xff] }
  0xab   :  { %452 = vmatpush.msrb.mxu0 %v2148_v57  ;;  %472 = vmatpush.msrb.mxu1 %v2149_v59  ;;  %v2159_v57 = vld [vmem:[#allocation38_spill] sm:$0xff]  ;;  %v2160_v59 = vld [vmem:[#allocation39_spill] sm:$0xff] }
  0xac   :  { %492 = vmatpush.msrb.mxu2 %v2150_v61  ;;  %512 = vmatpush.msrb.mxu3 %v2151_v63  ;;  %v2161_v61 = vld [vmem:[#allocation40_spill] sm:$0xff]  ;;  %v2162_v63 = vld [vmem:[#allocation41_spill] sm:$0xff] }
  0xad   :  { %453 = vmatpush.msrb.mxu0 %v2152_v19  ;;  %473 = vmatpush.msrb.mxu1 %v2153_v62  ;;  %v2163_v19 = vld [vmem:[#allocation42_spill] sm:$0xff]  ;;  %v2164_v62 = vld [vmem:[#allocation43_spill] sm:$0xff] }
  0xae   :  { %493 = vmatpush.msrb.mxu2 %v2154_v53  ;;  %513 = vmatpush.msrb.mxu3 %v2155_v0  ;;  %v2165_v53 = vld [vmem:[#allocation44_spill] sm:$0xff]  ;;  %v2166_v0 = vld [vmem:[#allocation45_spill] sm:$0xff] }
  0xaf   :  { %454 = vmatpush.msrb.mxu0 %v2156_v54  ;;  %474 = vmatpush.msrb.mxu1 %v2157_v55  ;;  %v2167_v54 = vld [vmem:[#allocation46_spill] sm:$0xff]  ;;  %v2168_v55 = vld [vmem:[#allocation47_spill] sm:$0xff] }
  0xb0   :  { %494 = vmatpush.msrb.mxu2 %v2158_v56  ;;  %514 = vmatpush.msrb.mxu3 %v2159_v57  ;;  %v2169_v56 = vld [vmem:[#allocation48_spill] sm:$0xff]  ;;  %v2170_v57 = vld [vmem:[#allocation49_spill] sm:$0xff] }
  0xb1   :  { %455 = vmatpush.msrb.mxu0 %v2160_v59  ;;  %475 = vmatpush.msrb.mxu1 %v2161_v61  ;;  %v2171_v59 = vld [vmem:[#allocation50_spill] sm:$0xff]  ;;  %v2172_v61 = vld [vmem:[#allocation51_spill] sm:$0xff] }
  0xb2   :  { %495 = vmatpush.msrb.mxu2 %v2162_v63  ;;  %515 = vmatpush.msrb.mxu3 %v2163_v19  ;;  %v2173_v63 = vld [vmem:[#allocation52_spill] sm:$0xff]  ;;  %v2174_v19 = vld [vmem:[#allocation53_spill] sm:$0xff] }
  0xb3   :  { %456 = vmatpush.msrb.mxu0 %v2164_v62  ;;  %476 = vmatpush.msrb.mxu1 %v2165_v53  ;;  %v2175_v62 = vld [vmem:[#allocation54_spill] sm:$0xff]  ;;  %v368_v53 = vpop.xlane.xlu0 %367 }
  0xb4   :  { %496 = vmatpush.msrb.mxu2 %v2166_v0  ;;  %516 = vmatpush.msrb.mxu3 %v2167_v54  ;;  %v2176_v0 = vld [vmem:[#allocation55_spill] sm:$0xff]  ;;  %v2177_v54 = vld [vmem:[#allocation56_spill] sm:$0xff] }
  0xb5   :  { %457 = vmatpush.msrb.mxu0 %v2168_v55  ;;  %477 = vmatpush.msrb.mxu1 %v2169_v56  ;;  %v2178_v55 = vld [vmem:[#allocation57_spill] sm:$0xff]  ;;  %v2179_v56 = vld [vmem:[#allocation58_spill] sm:$0xff] }
  0xb6   :  { %497 = vmatpush.msrb.mxu2 %v2170_v57  ;;  %517 = vmatpush.msrb.mxu3 %v2171_v59  ;;  %v2180_v57 = vld [vmem:[#allocation59_spill] sm:$0xff]  ;;  %v2181_v59 = vld [vmem:[#allocation60_spill] sm:$0xff] }
  0xb7   :  { %458 = vmatpush.msrb.mxu0 %v2172_v61  ;;  %478 = vmatpush.msrb.mxu1 %v2173_v63  ;;  %v369_v61 = vmul.f32 %v368_v53, %v1573_v12  ;;  %v2182_v63 = vld [vmem:[#allocation61_spill] sm:$0xff] }
  0xb8   :  { %498 = vmatpush.msrb.mxu2 %v2174_v19  ;;  %518 = vmatpush.msrb.mxu3 %v2175_v62  ;;  %v2183_v19 = vld [vmem:[#allocation62_spill] sm:$0xff]  ;;  %v2184_v62 = vld [vmem:[#allocation63_spill] sm:$0xff]  ;;  %v2191_v53 = vld [vmem:[#allocation69_spill] sm:$0xff] }
  0xb9   :  { %459 = vmatpush.msrb.mxu0 %v2176_v0  ;;  %479 = vmatpush.msrb.mxu1 %v2177_v54  ;;  %v2186_v0 = vld [vmem:[#allocation65_spill] sm:$0xff]  ;;  %v2187_v54 = vld [vmem:[#allocation66_spill] sm:$0xff] }
  0xba   :  { %499 = vmatpush.msrb.mxu2 %v2178_v55  ;;  %519 = vmatpush.msrb.mxu3 %v2179_v56  ;;  %v370_v56 = vsub.f32 %v1171_v1, %v369_v61  ;;  %v2188_v55 = vld [vmem:[#allocation8_spill] sm:$0xff]  ;;  %v2197_v1 = vld [vmem:[#allocation75_spill] sm:$0xff] }
  0xbb   :  { %460 = vmatpush.msrb.mxu0 %v2180_v57  ;;  %480 = vmatpush.msrb.mxu1 %v2181_v59  ;;  %v371_v57 = vsub.f32 %v2188_v55, %v369_v61  ;;  %v2190_v59 = vld [vmem:[#allocation68_spill] sm:$0xff]  ;;  %v2199_v61 = vld [vmem:[#allocation77_spill] sm:$0xff] }
  0xbc   :  { %500 = vmatpush.msrb.mxu2 %v2182_v63  ;;  %520 = vmatpush.msrb.mxu3 %v2183_v19  ;;  %v2192_v63 = vld [vmem:[#allocation70_spill] sm:$0xff]  ;;  %v2193_v19 = vld [vmem:[#allocation71_spill] sm:$0xff]  ;;  %v2198_v55 = vld [vmem:[#allocation76_spill] sm:$0xff] }
  0xbd   :  { %461 = vmatpush.msrb.mxu0 %v2184_v62  ;;  %481 = vmatpush.msrb.mxu1 %v2185_v52  ;;  %v2194_v62 = vld [vmem:[#allocation72_spill] sm:$0xff]  ;;  %v2195_v52 = vld [vmem:[#allocation73_spill] sm:$0xff] }
  0xbe   :  { %501 = vmatpush.msrb.mxu2 %v2186_v0  ;;  %521 = vmatpush.msrb.mxu3 %v2187_v54  ;;  %v2196_v0 = vld [vmem:[#allocation74_spill] sm:$0xff] }
  0xbf   :  { %462 = vmatpush.msrb.mxu0 %v2189_v51  ;;  %482 = vmatpush.msrb.mxu1 %v2190_v59  ;;  %v2206_v59 = vld [vmem:[#allocation85_spill] sm:$0xff]  ;;  %v2207_v51 = vld [vmem:[#allocation86_spill] sm:$0xff] }
  0xc0   :  { %502 = vmatpush.msrb.mxu2 %v2191_v53  ;;  %522 = vmatpush.msrb.mxu3 %v2192_v63  ;;  %v2200_v53 = vld [vmem:[#allocation78_spill] sm:$0xff]  ;;  %v2201_v63 = vld [vmem:[#allocation80_spill] sm:$0xff] }
  0xc1   :  { %463 = vmatpush.msrb.mxu0 %v2193_v19  ;;  %483 = vmatpush.msrb.mxu1 %v2194_v62  ;;  %v2202_v19 = vld [vmem:[#allocation81_spill] sm:$0xff]  ;;  %v2203_v62 = vld [vmem:[#allocation82_spill] sm:$0xff] }
  0xc2   :  { %503 = vmatpush.msrb.mxu2 %v2195_v52  ;;  %523 = vmatpush.msrb.mxu3 %v2196_v0  ;;  %v2204_v52 = vld [vmem:[#allocation83_spill] sm:$0xff]  ;;  %v2205_v0 = vld [vmem:[#allocation84_spill] sm:$0xff] }
  0xc3   :  { %388 = vmatmul.f32.vlgmr.msra.gmra.mxu0 %v370_v56  ;;  %408 = vmatmul.f32.vlgmr.msra.gmra.mxu1 %v371_v57 }
  0xc4   :  { %428 = vmatmul.f32.vlgmr.msra.gmra.mxu2 %v370_v56  ;;  %448 = vmatmul.f32.vlgmr.msra.gmra.mxu3 %v371_v57 }
  0xc5   :  { %464 = vmatpush.msrb.mxu0 %v2197_v1  ;;  %484 = vmatpush.msrb.mxu1 %v2198_v55  ;;  %v2208_v1 = vld [vmem:[#allocation87_spill] sm:$0xff]  ;;  %v2209_v55 = vld [vmem:[#allocation88_spill] sm:$0xff] }
  0xc6   :  { %504 = vmatpush.msrb.mxu2 %v2199_v61  ;;  %524 = vmatpush.msrb.mxu3 %v2200_v53 }
  0xc7   :  { %465 = vmatpush.msrb.mxu0 %v2201_v63  ;;  %485 = vmatpush.msrb.mxu1 %v2202_v19 }
  0xc8   :  { %505 = vmatpush.msrb.mxu2 %v2203_v62  ;;  %525 = vmatpush.msrb.mxu3 %v2204_v52 }
  0xc9   :  { %466 = vmatpush.msrb.mxu0 %v2205_v0  ;;  %486 = vmatpush.msrb.mxu1 %v2206_v59 }
  0xca   :  { %506 = vmatpush.msrb.mxu2 %v2207_v51  ;;  %526 = vmatpush.msrb.mxu3 %v2208_v1 }
  0xcb   :  { %467 = vmatpush.msrb.mxu0 %v2209_v55  ;;  %487 = vmatpush.msrb.mxu1 %v1562_v60 }
  0xcc   :  { %507 = vmatpush.msrb.mxu2 %v1564_v2  ;;  %527 = vmatpush.msrb.mxu3 %v1568_v58 }
  0xcd   :  { %468 = vmatmul.f32.vlgmr.msrb.gmra.mxu0 %v370_v56  ;;  %488 = vmatmul.f32.vlgmr.msrb.gmra.mxu1 %v371_v57 }
  0xce   :  { %508 = vmatmul.f32.vlgmr.msrb.gmra.mxu2 %v370_v56  ;;  %528 = vmatmul.f32.vlgmr.msrb.gmra.mxu3 %v371_v57  ;;  %v2256_v57 = vld [vmem:[#allocation55_spill] sm:$0xff] }
  0xcf   :  { %548 = vmatpush.msra.mxu0 %v1175_v3  ;;  %568 = vmatpush.msra.mxu1 %v1177_v4  ;;  %v2210_v3 = vld [vmem:[#allocation9_spill] sm:$0xff]  ;;  %v2211_v4 = vld [vmem:[#allocation10_spill] sm:$0xff] }
  0xd0   :  { %588 = vmatpush.msra.mxu2 %v1179_v5  ;;  %608 = vmatpush.msra.mxu3 %v1183_v6  ;;  %v2212_v5 = vld [vmem:[#allocation11_spill] sm:$0xff]  ;;  %v2213_v6 = vld [vmem:[#allocation12_spill] sm:$0xff] }
  0xd1   :  { %549 = vmatpush.msra.mxu0 %v1185_v7  ;;  %569 = vmatpush.msra.mxu1 %v1187_v8  ;;  %v2214_v7 = vld [vmem:[#allocation13_spill] sm:$0xff]  ;;  %v2215_v8 = vld [vmem:[#allocation14_spill] sm:$0xff] }
  0xd2   :  { %589 = vmatpush.msra.mxu2 %v1190_v9  ;;  %609 = vmatpush.msra.mxu3 %v1192_v10  ;;  %v2216_v9 = vld [vmem:[#allocation15_spill] sm:$0xff]  ;;  %v2217_v10 = vld [vmem:[#allocation16_spill] sm:$0xff] }
  0xd3   :  { %550 = vmatpush.msra.mxu0 %v1194_v11  ;;  %570 = vmatpush.msra.mxu1 %v1203_v13  ;;  %v2218_v11 = vld [vmem:[#allocation17_spill] sm:$0xff]  ;;  %v2219_v13 = vld [vmem:[#allocation18_spill] sm:$0xff] }
  0xd4   :  { %590 = vmatpush.msra.mxu2 %v1205_v14  ;;  %610 = vmatpush.msra.mxu3 %v1209_v15  ;;  %v2220_v14 = vld [vmem:[#allocation19_spill] sm:$0xff]  ;;  %v2221_v15 = vld [vmem:[#allocation20_spill] sm:$0xff] }
  0xd5   :  { %551 = vmatpush.msra.mxu0 %v1211_v16  ;;  %571 = vmatpush.msra.mxu1 %v1215_v17  ;;  %v2222_v16 = vld [vmem:[#allocation21_spill] sm:$0xff]  ;;  %v2223_v17 = vld [vmem:[#allocation22_spill] sm:$0xff] }
  0xd6   :  { %591 = vmatpush.msra.mxu2 %v1217_v18  ;;  %611 = vmatpush.msra.mxu3 %v1223_v20  ;;  %v2224_v18 = vld [vmem:[#allocation23_spill] sm:$0xff]  ;;  %v2225_v20 = vld [vmem:[#allocation24_spill] sm:$0xff] }
  0xd7   :  { %552 = vmatpush.msra.mxu0 %v1225_v21  ;;  %572 = vmatpush.msra.mxu1 %v1229_v22  ;;  %v2226_v21 = vld [vmem:[#allocation25_spill] sm:$0xff]  ;;  %v2227_v22 = vld [vmem:[#allocation26_spill] sm:$0xff] }
  0xd8   :  { %592 = vmatpush.msra.mxu2 %v1233_v23  ;;  %612 = vmatpush.msra.mxu3 %v1235_v24  ;;  %v2228_v23 = vld [vmem:[#allocation27_spill] sm:$0xff]  ;;  %v2229_v24 = vld [vmem:[#allocation28_spill] sm:$0xff] }
  0xd9   :  { %553 = vmatpush.msra.mxu0 %v1239_v25  ;;  %573 = vmatpush.msra.mxu1 %v1241_v26  ;;  %v2230_v25 = vld [vmem:[#allocation29_spill] sm:$0xff]  ;;  %v2231_v26 = vld [vmem:[#allocation30_spill] sm:$0xff] }
  0xda   :  { %593 = vmatpush.msra.mxu2 %v1244_v27  ;;  %613 = vmatpush.msra.mxu3 %v1246_v28  ;;  %v2232_v27 = vld [vmem:[#allocation31_spill] sm:$0xff]  ;;  %v2233_v28 = vld [vmem:[#allocation32_spill] sm:$0xff] }
  0xdb   :  { %554 = vmatpush.msra.mxu0 %v1250_v29  ;;  %574 = vmatpush.msra.mxu1 %v1252_v30  ;;  %v2234_v29 = vld [vmem:[#allocation33_spill] sm:$0xff]  ;;  %v2235_v30 = vld [vmem:[#allocation34_spill] sm:$0xff]  ;;  %v544_v56 = vpop.xlane.xlu1 %543 }
  0xdc   :  { %594 = vmatpush.msra.mxu2 %v1256_v31  ;;  %614 = vmatpush.msra.mxu3 %v1258_v32  ;;  %v2236_v31 = vld [vmem:[#allocation35_spill] sm:$0xff]  ;;  %v2237_v32 = vld [vmem:[#allocation36_spill] sm:$0xff] }
  0xdd   :  { %555 = vmatpush.msra.mxu0 %v1262_v33  ;;  %575 = vmatpush.msra.mxu1 %v1264_v34  ;;  %v2238_v33 = vld [vmem:[#allocation37_spill] sm:$0xff]  ;;  %v2239_v34 = vld [vmem:[#allocation38_spill] sm:$0xff] }
  0xde   :  { %595 = vmatpush.msra.mxu2 %v1268_v35  ;;  %615 = vmatpush.msra.mxu3 %v1270_v36  ;;  %v2240_v35 = vld [vmem:[#allocation39_spill] sm:$0xff]  ;;  %v2241_v36 = vld [vmem:[#allocation40_spill] sm:$0xff] }
  0xdf   :  { %556 = vmatpush.msra.mxu0 %v1274_v37  ;;  %576 = vmatpush.msra.mxu1 %v1276_v38  ;;  %v2242_v37 = vld [vmem:[#allocation41_spill] sm:$0xff]  ;;  %v2243_v38 = vld [vmem:[#allocation42_spill] sm:$0xff] }
  0xe0   :  { %596 = vmatpush.msra.mxu2 %v1280_v39  ;;  %616 = vmatpush.msra.mxu3 %v1282_v40  ;;  %v2244_v39 = vld [vmem:[#allocation43_spill] sm:$0xff]  ;;  %v2245_v40 = vld [vmem:[#allocation44_spill] sm:$0xff] }
  0xe1   :  { %557 = vmatpush.msra.mxu0 %v1286_v41  ;;  %577 = vmatpush.msra.mxu1 %v1288_v42  ;;  %v2246_v41 = vld [vmem:[#allocation45_spill] sm:$0xff]  ;;  %v2247_v42 = vld [vmem:[#allocation46_spill] sm:$0xff] }
  0xe2   :  { %597 = vmatpush.msra.mxu2 %v1292_v43  ;;  %617 = vmatpush.msra.mxu3 %v1294_v44  ;;  %v2248_v43 = vld [vmem:[#allocation47_spill] sm:$0xff]  ;;  %v2249_v44 = vld [vmem:[#allocation48_spill] sm:$0xff] }
  0xe3   :  { %558 = vmatpush.msra.mxu0 %v1298_v45  ;;  %578 = vmatpush.msra.mxu1 %v1300_v46  ;;  %v2250_v45 = vld [vmem:[#allocation49_spill] sm:$0xff]  ;;  %v2251_v46 = vld [vmem:[#allocation50_spill] sm:$0xff] }
  0xe4   :  { %598 = vmatpush.msra.mxu2 %v1304_v47  ;;  %618 = vmatpush.msra.mxu3 %v1306_v48  ;;  %v2252_v47 = vld [vmem:[#allocation51_spill] sm:$0xff]  ;;  %v2253_v48 = vld [vmem:[#allocation52_spill] sm:$0xff] }
  0xe5   :  { %559 = vmatpush.msra.mxu0 %v1310_v49  ;;  %579 = vmatpush.msra.mxu1 %v1312_v50  ;;  %v2254_v49 = vld [vmem:[#allocation53_spill] sm:$0xff]  ;;  %v2255_v50 = vld [vmem:[#allocation54_spill] sm:$0xff] }
  0xe6   :  { %599 = vmatpush.msra.mxu2 %v2210_v3  ;;  %619 = vmatpush.msra.mxu3 %v2211_v4  ;;  %v2257_v3 = vld [vmem:[#allocation56_spill] sm:$0xff]  ;;  %v2258_v4 = vld [vmem:[#allocation57_spill] sm:$0xff] }
  0xe7   :  { %560 = vmatpush.msra.mxu0 %v2212_v5  ;;  %580 = vmatpush.msra.mxu1 %v2213_v6  ;;  %v2259_v5 = vld [vmem:[#allocation58_spill] sm:$0xff]  ;;  %v2260_v6 = vld [vmem:[#allocation59_spill] sm:$0xff] }
  0xe8   :  { %600 = vmatpush.msra.mxu2 %v2214_v7  ;;  %620 = vmatpush.msra.mxu3 %v2215_v8  ;;  %v2261_v7 = vld [vmem:[#allocation60_spill] sm:$0xff]  ;;  %v545_v8 = vmul.f32 %v544_v56, %v1573_v12  ;;  %v2268_v12 = vld [vmem:[#allocation67_spill] sm:$0xff] }
  0xe9   :  { %561 = vmatpush.msra.mxu0 %v2216_v9  ;;  %581 = vmatpush.msra.mxu1 %v2217_v10  ;;  %v2262_v9 = vld [vmem:[#allocation61_spill] sm:$0xff]  ;;  %v2263_v10 = vld [vmem:[#allocation62_spill] sm:$0xff] }
  0xea   :  { %601 = vmatpush.msra.mxu2 %v2218_v11  ;;  %621 = vmatpush.msra.mxu3 %v2219_v13  ;;  %v2264_v11 = vld [vmem:[#allocation63_spill] sm:$0xff]  ;;  %v2265_v13 = vld [vmem:[#allocation64_spill] sm:$0xff] }
  0xeb   :  { %562 = vmatpush.msra.mxu0 %v2220_v14  ;;  %582 = vmatpush.msra.mxu1 %v2221_v15  ;;  %v2266_v14 = vld [vmem:[#allocation65_spill] sm:$0xff]  ;;  %v1072_v15 = vld [vmem:[%s1891_s0 + $0x10] sm:$0xff]  ;;  %s1132_s0 = smov 127  }
  0xec   :  { %602 = vmatpush.msra.mxu2 %v2222_v16  ;;  %622 = vmatpush.msra.mxu3 %v2223_v17  ;;  %v546_v16 = vsub.f32 %v1072_v15, %v545_v8  ;;  %v2267_v17 = vld [vmem:[#allocation79_spill] sm:$0xff] }
  0xed   :  { %563 = vmatpush.msra.mxu0 %v2224_v18  ;;  %583 = vmatpush.msra.mxu1 %v2225_v20  ;;  %v547_v18 = vsub.f32 %v2267_v17, %v545_v8  ;;  %v2269_v20 = vld [vmem:[#allocation68_spill] sm:$0xff] }
  0xee   :  { %603 = vmatpush.msra.mxu2 %v2226_v21  ;;  %623 = vmatpush.msra.mxu3 %v2227_v22  ;;  %v2270_v21 = vld [vmem:[#allocation69_spill] sm:$0xff]  ;;  %v2271_v22 = vld [vmem:[#allocation70_spill] sm:$0xff] }
  0xef   :  { %628 = vmatpush.msrb.mxu0 %v2228_v23  ;;  %648 = vmatpush.msrb.mxu1 %v2229_v24  ;;  %v2272_v23 = vld [vmem:[#allocation71_spill] sm:$0xff]  ;;  %v2273_v24 = vld [vmem:[#allocation72_spill] sm:$0xff] }
  0xf0   :  { %668 = vmatpush.msrb.mxu2 %v2230_v25  ;;  %688 = vmatpush.msrb.mxu3 %v2231_v26  ;;  %v2275_v25 = vld [vmem:[#allocation74_spill] sm:$0xff]  ;;  %v2276_v26 = vld [vmem:[#allocation75_spill] sm:$0xff] }
  0xf1   :  { %629 = vmatpush.msrb.mxu0 %v2232_v27  ;;  %649 = vmatpush.msrb.mxu1 %v2233_v28  ;;  %v2277_v27 = vld [vmem:[#allocation76_spill] sm:$0xff] }
  0xf2   :  { %669 = vmatpush.msrb.mxu2 %v2234_v29  ;;  %689 = vmatpush.msrb.mxu3 %v2235_v30 }
  0xf3   :  { %630 = vmatpush.msrb.mxu0 %v2236_v31  ;;  %650 = vmatpush.msrb.mxu1 %v2237_v32 }
  0xf4   :  { %670 = vmatpush.msrb.mxu2 %v2238_v33  ;;  %690 = vmatpush.msrb.mxu3 %v2239_v34 }
  0xf5   :  { %631 = vmatpush.msrb.mxu0 %v2240_v35  ;;  %651 = vmatpush.msrb.mxu1 %v2241_v36 }
  0xf6   :  { %671 = vmatpush.msrb.mxu2 %v2242_v37  ;;  %691 = vmatpush.msrb.mxu3 %v2243_v38 }
  0xf7   :  { %632 = vmatpush.msrb.mxu0 %v2244_v39  ;;  %652 = vmatpush.msrb.mxu1 %v2245_v40 }
  0xf8   :  { %672 = vmatpush.msrb.mxu2 %v2246_v41  ;;  %692 = vmatpush.msrb.mxu3 %v2247_v42 }
  0xf9   :  { %633 = vmatpush.msrb.mxu0 %v2248_v43  ;;  %653 = vmatpush.msrb.mxu1 %v2249_v44 }
  0xfa   :  { %673 = vmatpush.msrb.mxu2 %v2250_v45  ;;  %693 = vmatpush.msrb.mxu3 %v2251_v46 }
  0xfb   :  { %634 = vmatpush.msrb.mxu0 %v2252_v47  ;;  %654 = vmatpush.msrb.mxu1 %v2253_v48 }
  0xfc   :  { %674 = vmatpush.msrb.mxu2 %v2254_v49  ;;  %694 = vmatpush.msrb.mxu3 %v2255_v50 }
  0xfd   :  { %635 = vmatpush.msrb.mxu0 %v2256_v57  ;;  %655 = vmatpush.msrb.mxu1 %v2257_v3 }
  0xfe   :  { %675 = vmatpush.msrb.mxu2 %v2258_v4  ;;  %695 = vmatpush.msrb.mxu3 %v2259_v5 }
  0xff   :  { %636 = vmatpush.msrb.mxu0 %v2260_v6  ;;  %656 = vmatpush.msrb.mxu1 %v2261_v7 }
 0x100   :  { %676 = vmatpush.msrb.mxu2 %v2262_v9  ;;  %696 = vmatpush.msrb.mxu3 %v2263_v10 }
 0x101   :  { %637 = vmatpush.msrb.mxu0 %v2264_v11  ;;  %657 = vmatpush.msrb.mxu1 %v2265_v13 }
 0x102   :  { %677 = vmatpush.msrb.mxu2 %v2266_v14  ;;  %697 = vmatpush.msrb.mxu3 %v2187_v54  ;;  %v2274_v54 = vld [vmem:[#allocation73_spill] sm:$0xff] }
 0x103   :  { %638 = vmatpush.msrb.mxu0 %v2268_v12  ;;  %658 = vmatpush.msrb.mxu1 %v2269_v20 }
 0x104   :  { %678 = vmatpush.msrb.mxu2 %v2270_v21  ;;  %698 = vmatpush.msrb.mxu3 %v2271_v22 }
 0x105   :  { %639 = vmatpush.msrb.mxu0 %v2272_v23  ;;  %659 = vmatpush.msrb.mxu1 %v2273_v24  ;;  %v716_v23 = vld [vmem:[#allocation4] sm:$0xff]  ;;  %v1134_v24 = vmov 24  }
 0x106   :  { %679 = vmatpush.msrb.mxu2 %v2274_v54  ;;  %699 = vmatpush.msrb.mxu3 %v2275_v25 }
 0x107   :  { %564 = vmatmul.f32.vlgmr.msra.gmra.mxu0 %v546_v16  ;;  %584 = vmatmul.f32.vlgmr.msra.gmra.mxu1 %v547_v18 }
 0x108   :  { %604 = vmatmul.f32.vlgmr.msra.gmra.mxu2 %v546_v16  ;;  %624 = vmatmul.f32.vlgmr.msra.gmra.mxu3 %v547_v18 }
 0x109   :  { %640 = vmatpush.msrb.mxu0 %v2276_v26  ;;  %660 = vmatpush.msrb.mxu1 %v2277_v27 }
 0x10a   :  { %680 = vmatpush.msrb.mxu2 %v2199_v61  ;;  %700 = vmatpush.msrb.mxu3 %v2200_v53 }
 0x10b   :  { %641 = vmatpush.msrb.mxu0 %v2201_v63  ;;  %661 = vmatpush.msrb.mxu1 %v2202_v19  ;;  %v255_v63 = vpop.f32.mrf.mxu2 }
 0x10c   :  { %681 = vmatpush.msrb.mxu2 %v2203_v62  ;;  %701 = vmatpush.msrb.mxu3 %v2204_v52  ;;  %v215_v52 = vpop.f32.mrf.mxu0 }
 0x10d   :  { %642 = vmatpush.msrb.mxu0 %v2205_v0  ;;  %662 = vmatpush.msrb.mxu1 %v2206_v59  ;;  %v235_v0 = vpop.f32.mrf.mxu1  ;;  %v275_v59 = vpop.f32.mrf.mxu3 }
 0x10e   :  { %682 = vmatpush.msrb.mxu2 %v2207_v51  ;;  %702 = vmatpush.msrb.mxu3 %v2208_v1  ;;  %v236_v35 = vadd.f32 %v235_v0, %v215_v52  ;;  %v276_v3 = vadd.f32 %v275_v59, %v255_v63  ;;  %v46_v59 = vlaneseq }
 0x10f   :  { %643 = vmatpush.msrb.mxu0 %v2209_v55  ;;  %663 = vmatpush.msrb.mxu1 %v1562_v60 }
 0x110   :  { %683 = vmatpush.msrb.mxu2 %v1564_v2  ;;  %703 = vmatpush.msrb.mxu3 %v1568_v58  ;;  %v358_v46 = vmul.f32 %v236_v35, %v236_v35  ;;  %v359_v14 = vmul.f32 %v276_v3, %v276_v3  ;;  %v1136_v3 = vmov 8  }
 0x111   :  { %644 = vmatmul.f32.vlgmr.msrb.gmra.mxu0 %v546_v16  ;;  %664 = vmatmul.f32.vlgmr.msrb.gmra.mxu1 %v547_v18 }
 0x112   :  { %684 = vmatmul.f32.vlgmr.msrb.gmra.mxu2 %v546_v16  ;;  %704 = vmatmul.f32.vlgmr.msrb.gmra.mxu3 %v547_v18 }
 0x113   :  { %1058 = vset.pattern.permute.xlu2 %v1134_v24  ;;  %1059 = vset.pattern.permute.xlu0 %v1134_v24 }
 0x114   :  { %v295_v19 = vpop.f32.mrf.mxu0 }
 0x115   :  { %v315_v51 = vpop.f32.mrf.mxu1  ;;  %v335_v62 = vpop.f32.mrf.mxu2 }
 0x116   :  { %v355_v53 = vpop.f32.mrf.mxu3  ;;  %v316_v34 = vadd.f32 %v315_v51, %v295_v19  ;;  %v47_v19 = vand.u32 127, %v46_v59 }
 0x117   :  { %v356_v49 = vadd.f32 %v355_v53, %v335_v62 }
 0x118   :  { %v360_v40 = vmul.f32 %v316_v34, %v316_v34  ;;  %v48_v51 = vadd.s32 128, %v47_v19 }
 0x119   :  { %v361_v8 = vmul.f32 %v356_v49, %v356_v49 }
 0x11a   :  { %v362_v50 = vadd.f32 %v360_v40, %v358_v46  ;;  %vm50_vm5 = vcmp.lt.s32.totalorder %v48_v51, 129 }
 0x11b   :  { %v363_v17 = vadd.f32 %v361_v8, %v359_v14 }
 0x140   :  { %v389_v1 = vpop.f32.mrf.mxu0  ;;  %v409_v55 = vpop.f32.mrf.mxu1 }
 0x141   :  { %v410_v32 = vadd.f32 %v409_v55, %v389_v1 }
 0x143   :  { %v532_v36 = vmul.f32 %v410_v32, %v410_v32 }
 0x147   :  { %v429_v61 = vpop.f32.mrf.mxu2  ;;  %v449_v60 = vpop.f32.mrf.mxu3 }
 0x148   :  { %v450_v42 = vadd.f32 %v449_v60, %v429_v61  ;;  %v1135_v60 = vmov 0.0  }
 0x14a   :  { %v469_v28 = vpop.f32.mrf.mxu0  ;;  %v489_v2 = vpop.f32.mrf.mxu1  ;;  %v533_v4 = vmul.f32 %v450_v42, %v450_v42 }
 0x14b   :  { %v490_v33 = vadd.f32 %v489_v2, %v469_v28  ;;  %v1858_v28 = vsel %vm50_vm5, 1.0, %v1135_v60 }
 0x14d   :  { %v534_v37 = vmul.f32 %v490_v33, %v490_v33 }
 0x14f   :  { %v536_v47 = vadd.f32 %v534_v37, %v532_v36 }
 0x151   :  { %v509_v29 = vpop.f32.mrf.mxu2  ;;  %v529_v58 = vpop.f32.mrf.mxu3  ;;  %v538_v6 = vadd.f32 %v536_v47, %v362_v50 }
 0x152   :  { %v530_v43 = vadd.f32 %v529_v58, %v509_v29 }
 0x154   :  { %v535_v5 = vmul.f32 %v530_v43, %v530_v43 }
 0x156   :  { %v537_v15 = vadd.f32 %v535_v5, %v533_v4 }
 0x158   :  { %v539_v20 = vadd.f32 %v537_v15, %v363_v17 }
 0x184   :  { %v565_v30 = vpop.f32.mrf.mxu0  ;;  %v585_v31 = vpop.f32.mrf.mxu1 }
 0x185   :  { %v586_v41 = vadd.f32 %v585_v31, %v565_v30  ;;  %v717_v30 = vld [vmem:[#allocation4 + $0x10] sm:$0xff] }
 0x187   :  { %v708_v56 = vmul.f32 %v586_v41, %v586_v41 }
 0x18b   :  { %v605_v38 = vpop.f32.mrf.mxu2  ;;  %v625_v39 = vpop.f32.mrf.mxu3 }
 0x18c   :  { %v626_v9 = vadd.f32 %v625_v39, %v605_v38 }
 0x18e   :  { %v645_v44 = vpop.f32.mrf.mxu0  ;;  %v665_v45 = vpop.f32.mrf.mxu1  ;;  %v709_v18 = vmul.f32 %v626_v9, %v626_v9 }
 0x18f   :  { %v666_v48 = vadd.f32 %v665_v45, %v645_v44  ;;  %v718_v45 = vld [vmem:[#allocation4 + $0x20] sm:$0xff] }
 0x191   :  { %v710_v57 = vmul.f32 %v666_v48, %v666_v48 }
 0x193   :  { %v712_v7 = vadd.f32 %v710_v57, %v708_v56  ;;  %v719_v57 = vld [vmem:[#allocation4 + $0x30] sm:$0xff] }
 0x195   :  { %v685_v10 = vpop.f32.mrf.mxu2  ;;  %v705_v11 = vpop.f32.mrf.mxu3  ;;  %v714_v13 = vadd.f32 %v712_v7, %v538_v6 }
 0x196   :  { %v706_v16 = vadd.f32 %v705_v11, %v685_v10 }
 0x197   :  { %731 = vrot.lane.b32.xlu0 %v714_v13, %s1132_s0  ;;  %722 = vrot.lane.b32.xlu2 %v714_v13, %s1133_s7 }
 0x198   :  { %v711_v12 = vmul.f32 %v706_v16, %v706_v16 }
 0x19a   :  { %v713_v21 = vadd.f32 %v711_v12, %v709_v18 }
 0x19c   :  { %v715_v22 = vadd.f32 %v713_v21, %v539_v20 }
 0x19e   :  { %733 = vrot.lane.b32.xlu1 %v715_v22, %s1132_s0 }
 0x19f   :  { %724 = vrot.lane.b32.xlu2 %v715_v22, %s1133_s7 }
 0x1a7   :  { %742 = vperm.xlu2 %1058, %v716_v23  }
 0x1f1   :  { %v723_v54 = vpop.permute.xlu2 %722 }
 0x1f9   :  { %v725_v27 = vpop.permute.xlu2 %724 }
 0x1fa   :  { %v727_v63 = vsel %vm726_vm2, %v723_v54, %v725_v27 }
 0x201   :  { %v743_v62 = vpop.permute.xlu2 %742 }
 0x209   :  { %v732_v25 = vpop.permute.xlu0 %731 }
 0x210   :  { %v734_v26 = vpop.permute.xlu1 %733 }
 0x211   :  { %v736_v52 = vsel %vm735_vm1, %v732_v25, %v734_v26  ;;  %1030 = vmatpush.msk.msra.mxu1 %vm735_vm1, %v734_v26 }
 0x212   :  { %761 = vmatpush.msra.mxu0 %v736_v52 }
 0x213   :  { %782 = vmatpush.msra.mxu1 %v715_v22 }
 0x214   :  { %762 = vmatpush.msra.mxu0 %v714_v13 }
 0x215   :  { %783 = vmatpush.msra.mxu1 %v727_v63 }
 0x216   :  { %1028 = vmatpush.msk.msra.mxu0 %vm1849_vm3, %v723_v54  ;;  %1031 = vmatmul.msk.f32.vlgmr.msra.gmra.mxu1 %vm745_vm4, %v716_v23 }
 0x217   :  { %1029 = vmatmul.msk.f32.vlgmr.msra.gmra.mxu0 %vm745_vm4, %v716_v23 }
 0x293   :  { %v785_v53 = vpop.f32.mrf.mxu1 }
 0x294   :  { %v786_v1 = vadd.f32 %v785_v53, %v743_v62  ;;  %v765_v55 = vpop.f32.mrf.mxu0 }
 0x295   :  { %v766_v61 = vadd.f32 %v765_v55, %v743_v62 }
 0x296   :  { %v789_v2 = vmax.f32 %v786_v1, 0.0 }
 0x297   :  { %v788_v29 = vmax.f32 %v766_v61, 0.0 }
 0x298   :  { %v791_v58 = vmul.f32 %v1858_v28, %v789_v2 }
 0x299   :  { %794 = vrot.lane.b32.xlu1 %v788_v29, %s1133_s7 }
 0x29a   :  { %796 = vrot.lane.b32.xlu0 %v791_v58, %s1133_s7  ;;  %804 = vrot.lane.b32.xlu2 %v791_v58, %s1132_s0 }
 0x2a2   :  { %802 = vrot.lane.b32.xlu2 %v788_v29, %s1132_s0 }
 0x2aa   :  { %812 = vperm.xlu2 %1058, %v717_v30  }
 0x2b2   :  { %1060 = vset.pattern.permute.xlu2 %v1136_v3 }
 0x2f4   :  { %v805_v31 = vpop.permute.xlu2 %804 }
 0x2f5   :  { %1035 = vmatpush.msk.msra.mxu3 %vm735_vm1, %v805_v31 }
 0x2f7   :  { %851 = vmatpush.msra.mxu3 %v791_v58 }
 0x2fc   :  { %v803_v32 = vpop.permute.xlu2 %802 }
 0x2fd   :  { %v806_v33 = vsel %vm735_vm1, %v803_v32, %v805_v31 }
 0x2fe   :  { %830 = vmatpush.msra.mxu2 %v806_v33 }
 0x300   :  { %831 = vmatpush.msra.mxu2 %v788_v29 }
 0x304   :  { %v813_v37 = vpop.permute.xlu2 %812 }
 0x30b   :  { %v795_v34 = vpop.permute.xlu1 %794 }
 0x30c   :  { %v797_v35 = vpop.permute.xlu0 %796  ;;  %1033 = vmatpush.msk.msra.mxu2 %vm1849_vm3, %v795_v34 }
 0x30d   :  { %1034 = vmatmul.msk.f32.vlgmr.msra.gmra.mxu2 %vm745_vm4, %v717_v30  ;;  %v798_v36 = vsel %vm726_vm2, %v795_v34, %v797_v35 }
 0x30e   :  { %852 = vmatpush.msra.mxu3 %v798_v36 }
 0x30f   :  { %1036 = vmatmul.msk.f32.vlgmr.msra.gmra.mxu3 %vm745_vm4, %v717_v30 }
 0x390   :  { %v834_v38 = vpop.f32.mrf.mxu2 }
 0x391   :  { %v835_v39 = vadd.f32 %v834_v38, %v813_v37 }
 0x392   :  { %v854_v40 = vpop.f32.mrf.mxu3 }
 0x393   :  { %v857_v41 = vmax.f32 %v835_v39, 0.0  ;;  %v855_v42 = vadd.f32 %v854_v40, %v813_v37 }
 0x395   :  { %v858_v43 = vmax.f32 %v855_v42, 0.0  ;;  %863 = vrot.lane.b32.xlu2 %v857_v41, %s1133_s7  ;;  %871 = vrot.lane.b32.xlu0 %v857_v41, %s1132_s0 }
 0x397   :  { %v860_v44 = vmul.f32 %v1858_v28, %v858_v43 }
 0x399   :  { %873 = vrot.lane.b32.xlu1 %v860_v44, %s1132_s0 }
 0x39d   :  { %881 = vperm.xlu0 %1059, %v718_v45   ;;  %932 = vperm.xlu2 %1060, %v719_v57  }
 0x3a1   :  { %865 = vrot.lane.b32.xlu1 %v860_v44, %s1133_s7 }
 0x3a5   :  { %1061 = vset.pattern.permute.xlu0 %v1136_v3 }
 0x3ef   :  { %v864_v49 = vpop.permute.xlu2 %863 }
 0x3f7   :  { %v933_v13 = vpop.permute.xlu2 %932 }
 0x407   :  { %v872_v46 = vpop.permute.xlu0 %871 }
 0x40b   :  { %v874_v47 = vpop.permute.xlu1 %873 }
 0x40c   :  { %v875_v48 = vsel %vm735_vm1, %v872_v46, %v874_v47  ;;  %1040 = vmatpush.msk.msrb.mxu1 %vm735_vm1, %v874_v47 }
 0x40d   :  { %899 = vmatpush.msrb.mxu0 %v875_v48 }
 0x40e   :  { %920 = vmatpush.msrb.mxu1 %v860_v44 }
 0x40f   :  { %900 = vmatpush.msrb.mxu0 %v857_v41  ;;  %v882_v4 = vpop.permute.xlu0 %881 }
 0x411   :  { %1038 = vmatpush.msk.msrb.mxu0 %vm1849_vm3, %v864_v49 }
 0x412   :  { %1039 = vmatmul.msk.f32.vlgmr.msrb.gmra.mxu0 %vm745_vm4, %v718_v45 }
 0x413   :  { %v866_v50 = vpop.permute.xlu1 %865 }
 0x414   :  { %v867_v56 = vsel %vm726_vm2, %v864_v49, %v866_v50 }
 0x415   :  { %921 = vmatpush.msrb.mxu1 %v867_v56 }
 0x416   :  { %1041 = vmatmul.msk.f32.vlgmr.msrb.gmra.mxu1 %vm745_vm4, %v718_v45 }
 0x48f   :  { %v903_v5 = vpop.f32.mrf.mxu0 }
 0x490   :  { %v904_v6 = vadd.f32 %v903_v5, %v882_v4 }
 0x492   :  { %v926_v7 = vmax.f32 %v904_v6, 0.0 }
 0x493   :  { %v923_v8 = vpop.f32.mrf.mxu1 }
 0x494   :  { %v924_v9 = vadd.f32 %v923_v8, %v882_v4  ;;  %953 = vmatpush.msrb.mxu2 %v926_v7 }
 0x495   :  { %1042 = vmatmul.msk.f32.vlgmr.msrb.gmra.mxu2 %vm935_vm6, %v719_v57 }
 0x496   :  { %v927_v10 = vmax.f32 %v924_v9, 0.0 }
 0x498   :  { %v929_v11 = vmul.f32 %v1858_v28, %v927_v10 }
 0x49a   :  { %973 = vmatpush.msrb.mxu3 %v929_v11 }
 0x49b   :  { %1043 = vmatmul.msk.f32.vlgmr.msrb.gmra.mxu3 %vm935_vm6, %v719_v57 }
 0x518   :  { %v955_v14 = vpop.f32.mrf.mxu2 }
 0x519   :  { %v956_v15 = vadd.f32 %v955_v14, %v933_v13 }
 0x51b   :  { %v1044_v16 = vmul.f32 -1.442695, %v956_v15 }
 0x51d   :  { %1064 = vpow2.f32 %v1044_v16 }
 0x51e   :  { %v975_v17 = vpop.f32.mrf.mxu3 }
 0x51f   :  { %v976_v18 = vadd.f32 %v975_v17, %v933_v13 }
 0x521   :  { %v1045_v12 = vmul.f32 -1.442695, %v976_v18 }
 0x523   :  { %v1065_v20 = vpop.eup %1064  ;;  %1066 = vpow2.f32 %v1045_v12 }
 0x524   :  { %v984_v21 = vadd.f32 1.0, %v1065_v20 }
 0x526   :  { %1068 = vrcp.f32 %v984_v21  ;;  %v997_v26 = vand.u32 2147483648, %v984_v21  ;;  %vm991_vm7 = vweird.f32 %v984_v21  ;;  %v995_v52 = vand.u32 2147483647, %v984_v21 }
 0x528   :  { %v998_v19 = vor.u32 1.1754944e-38, %v997_v26  ;;  %vm996_vm10 = vcmp.eq.f32.partialorder %v995_v52, 8.507059e+37 }
 0x529   :  { %v1067_v22 = vpop.eup %1066 }
 0x52a   :  { %v985_v23 = vadd.f32 1.0, %v1067_v22 }
 0x52c   :  { %v1069_v24 = vpop.eup %1068  ;;  %1070 = vrcp.f32 %v985_v23  ;;  %v1012_v1 = vand.u32 2147483648, %v985_v23  ;;  %v1010_v60 = vand.u32 2147483647, %v985_v23  ;;  %vm1006_vm12 = vweird.f32 %v985_v23 }
 0x52d   :  { %v987_v54 = vmul.f32 %v1069_v24, %v984_v21  ;;  %vm992_vm8 = vweird.f32 %v1069_v24 }
 0x52e   :  { %vm993_vm9 = vmor %vm991_vm7, %vm992_vm8  ;;  %v1013_v2 = vor.u32 1.1754944e-38, %v1012_v1  ;;  %vm1011_vm14 = vcmp.eq.f32.partialorder %v1010_v60, 8.507059e+37 }
 0x52f   :  { %v988_v25 = vsub.f32 1.0, %v987_v54 }
 0x531   :  { %v989_v27 = vmul.f32 %v1069_v24, %v988_v25 }
 0x532   :  { %v1071_v0 = vpop.eup %1070 }
 0x533   :  { %v990_v63 = vadd.f32 %v1069_v24, %v989_v27  ;;  %v1002_v59 = vmul.f32 %v1071_v0, %v985_v23  ;;  %vm1007_vm11 = vweird.f32 %v1071_v0 }
 0x534   :  { %vm1008_vm13 = vmor %vm1006_vm12, %vm1007_vm11 }
 0x535   :  { %v994_v51 = vsel %vm993_vm9, %v1069_v24, %v990_v63  ;;  %v1003_v62 = vsub.f32 1.0, %v1002_v59 }
 0x536   :  { %v999_v53 = vsel %vm996_vm10, %v998_v19, %v994_v51 }
 0x537   :  { %v1016_v55 = vmul.f32 %v999_v53, %v926_v7  ;;  %v1004_v61 = vmul.f32 %v1071_v0, %v1003_v62 }
 0x539   :  { %1018 = vst [vmem:[%s1894_s3] sm:$0xff] %v1016_v55  ;;  %v1005_v28 = vadd.f32 %v1071_v0, %v1004_v61 }
 0x53b   :  { %v1009_v29 = vsel %vm1008_vm13, %v1071_v0, %v1005_v28 }
 0x53c   :  { %v1014_v58 = vsel %vm1011_vm14, %v1013_v2, %v1009_v29 }
 0x53d   :  { %v1017_v30 = vmul.f32 %v1014_v58, %v929_v11 }
 0x53f   :  { %1019 = vst [vmem:[%s1894_s3 + $0x8] sm:$0xff] %v1017_v30 }
 0x540   :  { %1024 = vsyncpa [#allocation3], 1 }
 0x541   :  { %1025 = vsyncpa [#allocation5], 1 }

</bundles_post_ra>
